<compile_context>
chip_gen: v5e
topology: v5e:2x2
jax: 0.10.0
libtpu: 0.0.40
codegen_flags: <defaults>
</compile_context>

<pallas_src>
import functools

import jax
import jax.numpy as jnp
from jax.experimental import pallas as pl
from jax.experimental.pallas import tpu as pltpu


# ----------------------------- Pallas kernels ------------------------------ #

def _conv1_bn_fold_kernel(x_ref, w1_ref, b1_ref, gamma_ref, beta_ref,
                          w1f_ref, b1f_ref, *, n_pix, eps):
    # x_ref   : (B, C, H*W) VMEM  lane-dense whole-batch input (tiny)
    # w1_ref  : (Cr, C) VMEM      b1/gamma/beta : (Cr, 1) VMEM
    # w1f_ref : (Cr, C)  folded conv1 weight (= scale * w1)
    # b1f_ref : (Cr, 1)  folded conv1 bias   (= scale * b1 + beta - mean*scale)
    B = x_ref.shape[0]
    s = jnp.zeros(b1f_ref.shape, jnp.float32)
    q = jnp.zeros(b1f_ref.shape, jnp.float32)
    # B is tiny & static: one (Cr,C)x(C,H*W) dot per image, no per-image grid
    # step / carried accumulator (per-step pipeline overhead dominates here).
    for b in range(B):
        h = (jnp.dot(w1_ref[...], x_ref[b], preferred_element_type=jnp.float32)
             + b1_ref[...])                                    # (Cr, H*W)
        s = s + jnp.sum(h, axis=1, keepdims=True)
        q = q + jnp.sum(h * h, axis=1, keepdims=True)
    # TODO(synk): switch to a centered/Welford accumulation if conv1 activations
    # have large mean relative to spread at real scales (E[h^2]-E[h]^2 cancel).
    mean = s * (1.0 / n_pix)
    var = jnp.maximum(q * (1.0 / n_pix) - mean * mean, 0.0)    # biased variance
    scale = gamma_ref[...] * jax.lax.rsqrt(var + eps)          # (Cr, 1), EUP
    w1f_ref[...] = scale * w1_ref[...]
    b1f_ref[...] = scale * b1_ref[...] + beta_ref[...] - mean * scale


def _fused_involution_kernel(w1f_ref, b1f_ref, w2_ref, b2_ref, mask_ref,
                             x_ref, o_ref, *, C, Cr, K, H, W, compute_dtype):
    # SMEM params : w1f_ref (Cr*C,)  b1f_ref (Cr,)  w2_ref (K*K*Cr,)  b2_ref (K*K,)
    # mask_ref : (K*K, H*W) VMEM boundary masks (1.0 = tap in bounds)
    # x_ref / o_ref : (1, C, H*W) VMEM lane-dense blocks for one batch image.
    HW = H * W
    pad = (K - 1) // 2
    x = x_ref[0]                                               # (C, H*W)

    # conv1 with folded BN affine, then ReLU (VPU broadcast-MACs with SMEM
    # scalars; the channel counts are far too small to use the MXU).
    act = []
    for cr in range(Cr):
        h = jnp.full((1, HW), b1f_ref[cr], jnp.float32)
        for c in range(C):
            h = h + w1f_ref[cr * C + c] * x[c][None, :]
        act.append(jnp.maximum(h, 0.0))                        # (1, H*W)

    # conv2 -> per-offset kernel map on the fly, fused involution.
    # Shifted KxK windows come from lane rolls of the flat (C, H*W) image;
    # out-of-bounds taps are zeroed via the precomputed masks, so there is no
    # padded scratch, no memset, and no misaligned slices.
    xs = x.astype(compute_dtype)
    acc = jnp.zeros((C, HW), jnp.float32)
    for idx in range(K * K):
        dy, dx = idx // K, idx % K
        km = jnp.full((1, HW), b2_ref[idx], jnp.float32)
        for cr in range(Cr):
            km = km + w2_ref[idx * Cr + cr] * act[cr]
        km = km * mask_ref[idx, :][None, :]                    # zero OOB taps
        d = (dy - pad) * W + (dx - pad)
        shift = (-d) % HW
        win = pltpu.roll(xs, shift=shift, axis=1) if shift else xs   # (C, H*W)
        prod = km.astype(compute_dtype) * win                  # bcast over C
        acc = acc + prod.astype(jnp.float32)
    o_ref[0] = acc                                             # full-width vst


# ------------------------------- Wrapper ----------------------------------- #

def involution2d_forward(x_nchw, params, kernel_size, reduction_ratio=4,
                         eps=1e-5, use_bf16_macs=False):
    # use_bf16_macs: enable bf16 multiply / fp32 accumulate in the involution
    # loop (worthwhile on v6e/v7x at large H*W; keep False on v5e and for
    # bit-tight comparisons against an fp32 reference).
    K = kernel_size
    assert K % 2 == 1, "odd kernel_size required (matches the PyTorch .view())"
    B, C, H, W = x_nchw.shape
    assert C % reduction_ratio == 0
    Cr = C // reduction_ratio
    KK = K * K
    HW = H * W
    pad = (K - 1) // 2

    x = x_nchw.astype(jnp.float32)
    x_flat = x.reshape(B, C, HW)                   # free view, lane-dense last dim
    w1 = params["w1"].reshape(Cr, C).astype(jnp.float32)
    b1 = params["b1"].reshape(Cr, 1).astype(jnp.float32)
    w2 = params["w2"].reshape(KK, Cr).astype(jnp.float32)
    b2 = params["b2"].reshape(KK).astype(jnp.float32)
    gamma = params["gamma"].reshape(Cr, 1).astype(jnp.float32)
    beta = params["beta"].reshape(Cr, 1).astype(jnp.float32)

    # -- pass 1: conv1 batch stats + BN fold, single grid step ----------------
    w1f, b1f = pl.pallas_call(
        functools.partial(_conv1_bn_fold_kernel, n_pix=float(B * HW), eps=eps),
        out_shape=(jax.ShapeDtypeStruct((Cr, C), jnp.float32),
                   jax.ShapeDtypeStruct((Cr, 1), jnp.float32)),
        in_specs=[pl.BlockSpec(memory_space=pltpu.MemorySpace.VMEM),   # x
                  pl.BlockSpec(memory_space=pltpu.MemorySpace.VMEM),   # w1
                  pl.BlockSpec(memory_space=pltpu.MemorySpace.VMEM),   # b1
                  pl.BlockSpec(memory_space=pltpu.MemorySpace.VMEM),   # gamma
                  pl.BlockSpec(memory_space=pltpu.MemorySpace.VMEM)],  # beta
        out_specs=(pl.BlockSpec(memory_space=pltpu.MemorySpace.VMEM),
                   pl.BlockSpec(memory_space=pltpu.MemorySpace.VMEM)),
    )(x_flat, w1, b1, gamma, beta)

    # -- boundary masks for the K*K rolled windows (constant-folded under jit) -
    ys = jnp.arange(H, dtype=jnp.int32)[:, None]
    xs = jnp.arange(W, dtype=jnp.int32)[None, :]
    mask_rows = []
    for idx in range(KK):
        oy, ox = idx // K - pad, idx % K - pad
        ok = ((ys + oy >= 0) & (ys + oy < H) & (xs + ox >= 0) & (xs + ox < W))
        mask_rows.append(ok.reshape(1, HW))
    masks = jnp.concatenate(mask_rows, axis=0).astype(jnp.float32)   # (KK, H*W)

    # -- pass 2: fused BN+ReLU+conv2+involution, lane-dense (C, H*W) blocks ----
    # TODO(synk): for large H*W, tile into H-strips with a (K-1)-row halo
    # (grid=(B, n_strips), rolls stay within a strip) and set
    # pltpu.CompilerParams(vmem_limit_bytes=...) so double-buffered blocks stay
    # under v7x's 64 MiB VMEM; whole-image blocks are fine at these sizes.
    compute_dtype = jnp.bfloat16 if use_bf16_macs else jnp.float32
    out_flat = pl.pallas_call(
        functools.partial(_fused_involution_kernel, C=C, Cr=Cr, K=K, H=H, W=W,
                          compute_dtype=compute_dtype),
        out_shape=jax.ShapeDtypeStruct((B, C, HW), jnp.float32),
        grid=(B,),
        in_specs=[
            pl.BlockSpec(memory_space=pltpu.MemorySpace.SMEM),    # w1f (folded)
            pl.BlockSpec(memory_space=pltpu.MemorySpace.SMEM),    # b1f (folded)
            pl.BlockSpec(memory_space=pltpu.MemorySpace.SMEM),    # w2
            pl.BlockSpec(memory_space=pltpu.MemorySpace.SMEM),    # b2
            pl.BlockSpec((KK, HW), lambda b: (0, 0)),             # masks
            pl.BlockSpec((1, C, HW), lambda b: (b, 0, 0)),        # x
        ],
        out_specs=pl.BlockSpec((1, C, HW), lambda b: (b, 0, 0)),
        compiler_params=pltpu.CompilerParams(dimension_semantics=("parallel",)),
    )(w1f.reshape(-1), b1f.reshape(-1), w2.reshape(-1), b2, masks, x_flat)
    return out_flat.reshape(B, C, H, W)


# ------------------------- Pure-JAX reference (check) ----------------------- #

def reference(x, params, K, eps=1e-5):
    B, C, H, W = x.shape
    Cr = params["w1"].shape[0]
    KK = K * K
    w1 = params["w1"].reshape(Cr, C)
    w2 = params["w2"].reshape(KK, Cr)
    h = jnp.einsum("bchw,oc->bohw", x, w1) + params["b1"][None, :, None, None]
    mean = h.mean(axis=(0, 2, 3))
    var = h.var(axis=(0, 2, 3))                      # biased, matches BN norm
    hbn = (h - mean[None, :, None, None]) / jnp.sqrt(var + eps)[None, :, None, None]
    hbn = hbn * params["gamma"][None, :, None, None] + params["beta"][None, :, None, None]
    hr = jnp.maximum(hbn, 0.0)
    kern = jnp.einsum("bchw,oc->bohw", hr, w2) + params["b2"][None, :, None, None]
    pad = (K - 1) // 2
    xp = jnp.pad(x, ((0, 0), (0, 0), (pad, pad), (pad, pad)))
    out = jnp.zeros((B, C, H, W), jnp.float32)
    for ky in range(K):
        for kx in range(K):
            out = out + kern[:, None, ky * K + kx, :, :] * xp[:, :, ky:ky + H, kx:kx + W]
    return out


# ---------------------------------- Main ------------------------------------ #

if __name__ == "__main__":
    B, C, H, W = 2, 8, 16, 16
    K = 3
    reduction_ratio = 4
    Cr = C // reduction_ratio
    KK = K * K

    key = jax.random.PRNGKey(0)
    k1, k2, k3, k4, kg, kb, kx = jax.random.split(key, 7)
    params = {
        "w1": 0.1 * jax.random.normal(k1, (Cr, C, 1, 1), jnp.float32),
        "b1": 0.1 * jax.random.normal(k2, (Cr,), jnp.float32),
        "w2": 0.1 * jax.random.normal(k3, (KK, Cr, 1, 1), jnp.float32),
        "b2": 0.1 * jax.random.normal(k4, (KK,), jnp.float32),
        "gamma": 1.0 + 0.1 * jax.random.normal(kg, (Cr,), jnp.float32),
        "beta": 0.1 * jax.random.normal(kb, (Cr,), jnp.float32),
    }
    x = jax.random.normal(kx, (B, C, H, W), jnp.float32)

    # Whole forward under one jit so the (now tiny) inter-kernel glue fuses.
    fwd = jax.jit(functools.partial(involution2d_forward, kernel_size=K,
                                    reduction_ratio=reduction_ratio))
    out = jax.block_until_ready(fwd(x, params))

    ref = jax.block_until_ready(reference(x, params, K))
    assert out.shape == (B, C, H, W), out.shape
    assert jnp.allclose(out, ref, rtol=1e-3, atol=1e-3), float(jnp.max(jnp.abs(out - ref)))

    print("KERNEL_OK")
</pallas_src>

<mosaic_0001>
module attributes {stable_mosaic.version = 11 : i64} {
  func.func @_conv1_bn_fold_kernel(%arg0: memref<2x8x256xf32, #tpu.memory_space<vmem>>, %arg1: memref<2x8xf32, #tpu.memory_space<vmem>>, %arg2: memref<2x1xf32, #tpu.memory_space<vmem>>, %arg3: memref<2x1xf32, #tpu.memory_space<vmem>>, %arg4: memref<2x1xf32, #tpu.memory_space<vmem>>, %arg5: memref<2x8xf32, #tpu.memory_space<vmem>>, %arg6: memref<2x1xf32, #tpu.memory_space<vmem>>) attributes {dimension_semantics = [], scalar_prefetch = 0 : i64, scratch_operands = 0 : i64, tpu.core_type = #tpu.core_type<tc>} {
    %cst = arith.constant 0.000000e+00 : f32
    %0 = vector.broadcast %cst : f32 to vector<2x1xf32>
    %cst_0 = arith.constant 0.000000e+00 : f32
    %1 = vector.broadcast %cst_0 : f32 to vector<2x1xf32>
    %c0 = arith.constant 0 : index
    %c0_1 = arith.constant 0 : index
    %2 = vector.load %arg1[%c0, %c0_1] : memref<2x8xf32, #tpu.memory_space<vmem>>, vector<2x8xf32>
    %c0_2 = arith.constant 0 : index
    %c0_3 = arith.constant 0 : index
    %c0_4 = arith.constant 0 : index
    %3 = vector.load %arg0[%c0_2, %c0_3, %c0_4] : memref<2x8x256xf32, #tpu.memory_space<vmem>>, vector<1x8x256xf32>
    %4 = vector.shape_cast %3 : vector<1x8x256xf32> to vector<8x256xf32>
    %cst_5 = arith.constant dense<0.000000e+00> : vector<2x256xf32>
    %5 = tpu.matmul %2, %4, %cst_5 {dimension_numbers = #tpu.dot_dimension_numbers<[1], [0], [0], [1], [0, 0, 1, 1], [], []>} : vector<2x8xf32>, vector<8x256xf32>, vector<2x256xf32> -> vector<2x256xf32>
    %c0_6 = arith.constant 0 : index
    %c0_7 = arith.constant 0 : index
    %6 = vector.load %arg2[%c0_6, %c0_7] : memref<2x1xf32, #tpu.memory_space<vmem>>, vector<2x1xf32>
    %7 = vector.broadcast %6 : vector<2x1xf32> to vector<2x256xf32>
    %8 = arith.addf %5, %7 : vector<2x256xf32>
    %cst_8 = arith.constant dense<0.000000e+00> : vector<2xf32>
    %9 = vector.multi_reduction <add>, %8, %cst_8 [1] : vector<2x256xf32> to vector<2xf32>
    %10 = vector.shape_cast %9 : vector<2xf32> to vector<2x1xf32>
    %11 = arith.addf %0, %10 : vector<2x1xf32>
    %12 = arith.mulf %8, %8 : vector<2x256xf32>
    %cst_9 = arith.constant dense<0.000000e+00> : vector<2xf32>
    %13 = vector.multi_reduction <add>, %12, %cst_9 [1] : vector<2x256xf32> to vector<2xf32>
    %14 = vector.shape_cast %13 : vector<2xf32> to vector<2x1xf32>
    %15 = arith.addf %1, %14 : vector<2x1xf32>
    %c0_10 = arith.constant 0 : index
    %c0_11 = arith.constant 0 : index
    %16 = vector.load %arg1[%c0_10, %c0_11] : memref<2x8xf32, #tpu.memory_space<vmem>>, vector<2x8xf32>
    %c1 = arith.constant 1 : index
    %c0_12 = arith.constant 0 : index
    %c0_13 = arith.constant 0 : index
    %17 = vector.load %arg0[%c1, %c0_12, %c0_13] : memref<2x8x256xf32, #tpu.memory_space<vmem>>, vector<1x8x256xf32>
    %18 = vector.shape_cast %17 : vector<1x8x256xf32> to vector<8x256xf32>
    %cst_14 = arith.constant dense<0.000000e+00> : vector<2x256xf32>
    %19 = tpu.matmul %16, %18, %cst_14 {dimension_numbers = #tpu.dot_dimension_numbers<[1], [0], [0], [1], [0, 0, 1, 1], [], []>} : vector<2x8xf32>, vector<8x256xf32>, vector<2x256xf32> -> vector<2x256xf32>
    %c0_15 = arith.constant 0 : index
    %c0_16 = arith.constant 0 : index
    %20 = vector.load %arg2[%c0_15, %c0_16] : memref<2x1xf32, #tpu.memory_space<vmem>>, vector<2x1xf32>
    %21 = vector.broadcast %20 : vector<2x1xf32> to vector<2x256xf32>
    %22 = arith.addf %19, %21 : vector<2x256xf32>
    %cst_17 = arith.constant dense<0.000000e+00> : vector<2xf32>
    %23 = vector.multi_reduction <add>, %22, %cst_17 [1] : vector<2x256xf32> to vector<2xf32>
    %24 = vector.shape_cast %23 : vector<2xf32> to vector<2x1xf32>
    %25 = arith.addf %11, %24 : vector<2x1xf32>
    %26 = arith.mulf %22, %22 : vector<2x256xf32>
    %cst_18 = arith.constant dense<0.000000e+00> : vector<2xf32>
    %27 = vector.multi_reduction <add>, %26, %cst_18 [1] : vector<2x256xf32> to vector<2xf32>
    %28 = vector.shape_cast %27 : vector<2xf32> to vector<2x1xf32>
    %29 = arith.addf %15, %28 : vector<2x1xf32>
    %cst_19 = arith.constant 0.001953125 : f32
    %30 = vector.broadcast %cst_19 : f32 to vector<2x1xf32>
    %31 = arith.mulf %25, %30 : vector<2x1xf32>
    %cst_20 = arith.constant 0.001953125 : f32
    %32 = vector.broadcast %cst_20 : f32 to vector<2x1xf32>
    %33 = arith.mulf %29, %32 : vector<2x1xf32>
    %34 = arith.mulf %31, %31 : vector<2x1xf32>
    %35 = arith.subf %33, %34 : vector<2x1xf32>
    %cst_21 = arith.constant 0.000000e+00 : f32
    %36 = vector.broadcast %cst_21 : f32 to vector<2x1xf32>
    %37 = arith.maximumf %35, %36 : vector<2x1xf32>
    %c0_22 = arith.constant 0 : index
    %c0_23 = arith.constant 0 : index
    %38 = vector.load %arg3[%c0_22, %c0_23] : memref<2x1xf32, #tpu.memory_space<vmem>>, vector<2x1xf32>
    %cst_24 = arith.constant 9.99999974E-6 : f32
    %39 = vector.broadcast %cst_24 : f32 to vector<2x1xf32>
    %40 = arith.addf %37, %39 : vector<2x1xf32>
    %41 = math.rsqrt %40 : vector<2x1xf32>
    %42 = arith.mulf %38, %41 : vector<2x1xf32>
    %c0_25 = arith.constant 0 : index
    %c0_26 = arith.constant 0 : index
    %43 = vector.load %arg1[%c0_25, %c0_26] : memref<2x8xf32, #tpu.memory_space<vmem>>, vector<2x8xf32>
    %44 = vector.broadcast %42 : vector<2x1xf32> to vector<2x8xf32>
    %45 = arith.mulf %44, %43 : vector<2x8xf32>
    %c0_27 = arith.constant 0 : index
    %c0_28 = arith.constant 0 : index
    %46 = vector.load %arg5[%c0_27, %c0_28] : memref<2x8xf32, #tpu.memory_space<vmem>>, vector<2x8xf32>
    tpu.vector_store %arg5[%c0_27, %c0_28], %45 {strides = array<i32>} : memref<2x8xf32, #tpu.memory_space<vmem>>, vector<2x8xf32>,
    %c0_29 = arith.constant 0 : index
    %c0_30 = arith.constant 0 : index
    %47 = vector.load %arg2[%c0_29, %c0_30] : memref<2x1xf32, #tpu.memory_space<vmem>>, vector<2x1xf32>
    %48 = arith.mulf %42, %47 : vector<2x1xf32>
    %c0_31 = arith.constant 0 : index
    %c0_32 = arith.constant 0 : index
    %49 = vector.load %arg4[%c0_31, %c0_32] : memref<2x1xf32, #tpu.memory_space<vmem>>, vector<2x1xf32>
    %50 = arith.addf %48, %49 : vector<2x1xf32>
    %51 = arith.mulf %31, %42 : vector<2x1xf32>
    %52 = arith.subf %50, %51 : vector<2x1xf32>
    %c0_33 = arith.constant 0 : index
    %c0_34 = arith.constant 0 : index
    %53 = vector.load %arg6[%c0_33, %c0_34] : memref<2x1xf32, #tpu.memory_space<vmem>>, vector<2x1xf32>
    tpu.vector_store %arg6[%c0_33, %c0_34], %52 {strides = array<i32>} : memref<2x1xf32, #tpu.memory_space<vmem>>, vector<2x1xf32>,
    return
  }
}

module attributes {stable_mosaic.version = 11 : i64} {
  func.func @_fused_involution_kernel(%arg0: i32, %arg1: memref<16xf32, #tpu.memory_space<smem>>, %arg2: memref<2xf32, #tpu.memory_space<smem>>, %arg3: memref<18xf32, #tpu.memory_space<smem>>, %arg4: memref<9xf32, #tpu.memory_space<smem>>, %arg5: memref<9x256xf32, #tpu.memory_space<vmem>>, %arg6: memref<1x8x256xf32, #tpu.memory_space<vmem>>, %arg7: memref<1x8x256xf32, #tpu.memory_space<vmem>>) attributes {dimension_semantics = [#tpu.dimension_semantics<parallel>], iteration_bounds = array<i64: 2>, scalar_prefetch = 0 : i64, scratch_operands = 0 : i64, tpu.core_type = #tpu.core_type<tc>, window_params = [{transform_indices = @transform_0, window_bounds = array<i64: 16>}, {transform_indices = @transform_1, window_bounds = array<i64: 2>}, {transform_indices = @transform_2, window_bounds = array<i64: 18>}, {transform_indices = @transform_3, window_bounds = array<i64: 9>}, {pipeline_mode = #tpu.pipeline_mode<synchronous>, transform_indices = @transform_4, window_bounds = array<i64: 9, 256>}, {transform_indices = @transform_5, window_bounds = array<i64: 1, 8, 256>}, {transform_indices = @transform_6, window_bounds = array<i64: 1, 8, 256>}]} {
    %c0 = arith.constant 0 : index
    %c0_0 = arith.constant 0 : index
    %c0_1 = arith.constant 0 : index
    %0 = vector.load %arg6[%c0, %c0_0, %c0_1] : memref<1x8x256xf32, #tpu.memory_space<vmem>>, vector<1x8x256xf32>
    %1 = vector.shape_cast %0 : vector<1x8x256xf32> to vector<8x256xf32>
    %c0_2 = arith.constant 0 : index
    %2 = memref.load %arg2[%c0_2] : memref<2xf32, #tpu.memory_space<smem>>
    %3 = vector.broadcast %2 : f32 to vector<1x256xf32>
    %c0_3 = arith.constant 0 : index
    %4 = memref.load %arg1[%c0_3] : memref<16xf32, #tpu.memory_space<smem>>
    %5 = vector.extract_strided_slice %1 {offsets = [0, 0], sizes = [1, 256], strides = [1, 1]} : vector<8x256xf32> to vector<1x256xf32>
    %6 = vector.shape_cast %5 : vector<1x256xf32> to vector<256xf32>
    %7 = vector.shape_cast %6 : vector<256xf32> to vector<1x256xf32>
    %8 = vector.broadcast %4 : f32 to vector<1x256xf32>
    %9 = arith.mulf %8, %7 : vector<1x256xf32>
    %10 = arith.addf %3, %9 : vector<1x256xf32>
    %c1 = arith.constant 1 : index
    %11 = memref.load %arg1[%c1] : memref<16xf32, #tpu.memory_space<smem>>
    %12 = vector.extract_strided_slice %1 {offsets = [1, 0], sizes = [1, 256], strides = [1, 1]} : vector<8x256xf32> to vector<1x256xf32>
    %13 = vector.shape_cast %12 : vector<1x256xf32> to vector<256xf32>
    %14 = vector.shape_cast %13 : vector<256xf32> to vector<1x256xf32>
    %15 = vector.broadcast %11 : f32 to vector<1x256xf32>
    %16 = arith.mulf %15, %14 : vector<1x256xf32>
    %17 = arith.addf %10, %16 : vector<1x256xf32>
    %c2 = arith.constant 2 : index
    %18 = memref.load %arg1[%c2] : memref<16xf32, #tpu.memory_space<smem>>
    %19 = vector.extract_strided_slice %1 {offsets = [2, 0], sizes = [1, 256], strides = [1, 1]} : vector<8x256xf32> to vector<1x256xf32>
    %20 = vector.shape_cast %19 : vector<1x256xf32> to vector<256xf32>
    %21 = vector.shape_cast %20 : vector<256xf32> to vector<1x256xf32>
    %22 = vector.broadcast %18 : f32 to vector<1x256xf32>
    %23 = arith.mulf %22, %21 : vector<1x256xf32>
    %24 = arith.addf %17, %23 : vector<1x256xf32>
    %c3 = arith.constant 3 : index
    %25 = memref.load %arg1[%c3] : memref<16xf32, #tpu.memory_space<smem>>
    %26 = vector.extract_strided_slice %1 {offsets = [3, 0], sizes = [1, 256], strides = [1, 1]} : vector<8x256xf32> to vector<1x256xf32>
    %27 = vector.shape_cast %26 : vector<1x256xf32> to vector<256xf32>
    %28 = vector.shape_cast %27 : vector<256xf32> to vector<1x256xf32>
    %29 = vector.broadcast %25 : f32 to vector<1x256xf32>
    %30 = arith.mulf %29, %28 : vector<1x256xf32>
    %31 = arith.addf %24, %30 : vector<1x256xf32>
    %c4 = arith.constant 4 : index
    %32 = memref.load %arg1[%c4] : memref<16xf32, #tpu.memory_space<smem>>
    %33 = vector.extract_strided_slice %1 {offsets = [4, 0], sizes = [1, 256], strides = [1, 1]} : vector<8x256xf32> to vector<1x256xf32>
    %34 = vector.shape_cast %33 : vector<1x256xf32> to vector<256xf32>
    %35 = vector.shape_cast %34 : vector<256xf32> to vector<1x256xf32>
    %36 = vector.broadcast %32 : f32 to vector<1x256xf32>
    %37 = arith.mulf %36, %35 : vector<1x256xf32>
    %38 = arith.addf %31, %37 : vector<1x256xf32>
    %c5 = arith.constant 5 : index
    %39 = memref.load %arg1[%c5] : memref<16xf32, #tpu.memory_space<smem>>
    %40 = vector.extract_strided_slice %1 {offsets = [5, 0], sizes = [1, 256], strides = [1, 1]} : vector<8x256xf32> to vector<1x256xf32>
    %41 = vector.shape_cast %40 : vector<1x256xf32> to vector<256xf32>
    %42 = vector.shape_cast %41 : vector<256xf32> to vector<1x256xf32>
    %43 = vector.broadcast %39 : f32 to vector<1x256xf32>
    %44 = arith.mulf %43, %42 : vector<1x256xf32>
    %45 = arith.addf %38, %44 : vector<1x256xf32>
    %c6 = arith.constant 6 : index
    %46 = memref.load %arg1[%c6] : memref<16xf32, #tpu.memory_space<smem>>
    %47 = vector.extract_strided_slice %1 {offsets = [6, 0], sizes = [1, 256], strides = [1, 1]} : vector<8x256xf32> to vector<1x256xf32>
    %48 = vector.shape_cast %47 : vector<1x256xf32> to vector<256xf32>
    %49 = vector.shape_cast %48 : vector<256xf32> to vector<1x256xf32>
    %50 = vector.broadcast %46 : f32 to vector<1x256xf32>
    %51 = arith.mulf %50, %49 : vector<1x256xf32>
    %52 = arith.addf %45, %51 : vector<1x256xf32>
    %c7 = arith.constant 7 : index
    %53 = memref.load %arg1[%c7] : memref<16xf32, #tpu.memory_space<smem>>
    %54 = vector.extract_strided_slice %1 {offsets = [7, 0], sizes = [1, 256], strides = [1, 1]} : vector<8x256xf32> to vector<1x256xf32>
    %55 = vector.shape_cast %54 : vector<1x256xf32> to vector<256xf32>
    %56 = vector.shape_cast %55 : vector<256xf32> to vector<1x256xf32>
    %57 = vector.broadcast %53 : f32 to vector<1x256xf32>
    %58 = arith.mulf %57, %56 : vector<1x256xf32>
    %59 = arith.addf %52, %58 : vector<1x256xf32>
    %cst = arith.constant 0.000000e+00 : f32
    %60 = vector.broadcast %cst : f32 to vector<1x256xf32>
    %61 = arith.maximumf %59, %60 : vector<1x256xf32>
    %c1_4 = arith.constant 1 : index
    %62 = memref.load %arg2[%c1_4] : memref<2xf32, #tpu.memory_space<smem>>
    %63 = vector.broadcast %62 : f32 to vector<1x256xf32>
    %c8 = arith.constant 8 : index
    %64 = memref.load %arg1[%c8] : memref<16xf32, #tpu.memory_space<smem>>
    %65 = vector.extract_strided_slice %1 {offsets = [0, 0], sizes = [1, 256], strides = [1, 1]} : vector<8x256xf32> to vector<1x256xf32>
    %66 = vector.shape_cast %65 : vector<1x256xf32> to vector<256xf32>
    %67 = vector.shape_cast %66 : vector<256xf32> to vector<1x256xf32>
    %68 = vector.broadcast %64 : f32 to vector<1x256xf32>
    %69 = arith.mulf %68, %67 : vector<1x256xf32>
    %70 = arith.addf %63, %69 : vector<1x256xf32>
    %c9 = arith.constant 9 : index
    %71 = memref.load %arg1[%c9] : memref<16xf32, #tpu.memory_space<smem>>
    %72 = vector.extract_strided_slice %1 {offsets = [1, 0], sizes = [1, 256], strides = [1, 1]} : vector<8x256xf32> to vector<1x256xf32>
    %73 = vector.shape_cast %72 : vector<1x256xf32> to vector<256xf32>
    %74 = vector.shape_cast %73 : vector<256xf32> to vector<1x256xf32>
    %75 = vector.broadcast %71 : f32 to vector<1x256xf32>
    %76 = arith.mulf %75, %74 : vector<1x256xf32>
    %77 = arith.addf %70, %76 : vector<1x256xf32>
    %c10 = arith.constant 10 : index
    %78 = memref.load %arg1[%c10] : memref<16xf32, #tpu.memory_space<smem>>
    %79 = vector.extract_strided_slice %1 {offsets = [2, 0], sizes = [1, 256], strides = [1, 1]} : vector<8x256xf32> to vector<1x256xf32>
    %80 = vector.shape_cast %79 : vector<1x256xf32> to vector<256xf32>
    %81 = vector.shape_cast %80 : vector<256xf32> to vector<1x256xf32>
    %82 = vector.broadcast %78 : f32 to vector<1x256xf32>
    %83 = arith.mulf %82, %81 : vector<1x256xf32>
    %84 = arith.addf %77, %83 : vector<1x256xf32>
    %c11 = arith.constant 11 : index
    %85 = memref.load %arg1[%c11] : memref<16xf32, #tpu.memory_space<smem>>
    %86 = vector.extract_strided_slice %1 {offsets = [3, 0], sizes = [1, 256], strides = [1, 1]} : vector<8x256xf32> to vector<1x256xf32>
    %87 = vector.shape_cast %86 : vector<1x256xf32> to vector<256xf32>
    %88 = vector.shape_cast %87 : vector<256xf32> to vector<1x256xf32>
    %89 = vector.broadcast %85 : f32 to vector<1x256xf32>
    %90 = arith.mulf %89, %88 : vector<1x256xf32>
    %91 = arith.addf %84, %90 : vector<1x256xf32>
    %c12 = arith.constant 12 : index
    %92 = memref.load %arg1[%c12] : memref<16xf32, #tpu.memory_space<smem>>
    %93 = vector.extract_strided_slice %1 {offsets = [4, 0], sizes = [1, 256], strides = [1, 1]} : vector<8x256xf32> to vector<1x256xf32>
    %94 = vector.shape_cast %93 : vector<1x256xf32> to vector<256xf32>
    %95 = vector.shape_cast %94 : vector<256xf32> to vector<1x256xf32>
    %96 = vector.broadcast %92 : f32 to vector<1x256xf32>
    %97 = arith.mulf %96, %95 : vector<1x256xf32>
    %98 = arith.addf %91, %97 : vector<1x256xf32>
    %c13 = arith.constant 13 : index
    %99 = memref.load %arg1[%c13] : memref<16xf32, #tpu.memory_space<smem>>
    %100 = vector.extract_strided_slice %1 {offsets = [5, 0], sizes = [1, 256], strides = [1, 1]} : vector<8x256xf32> to vector<1x256xf32>
    %101 = vector.shape_cast %100 : vector<1x256xf32> to vector<256xf32>
    %102 = vector.shape_cast %101 : vector<256xf32> to vector<1x256xf32>
    %103 = vector.broadcast %99 : f32 to vector<1x256xf32>
    %104 = arith.mulf %103, %102 : vector<1x256xf32>
    %105 = arith.addf %98, %104 : vector<1x256xf32>
    %c14 = arith.constant 14 : index
    %106 = memref.load %arg1[%c14] : memref<16xf32, #tpu.memory_space<smem>>
    %107 = vector.extract_strided_slice %1 {offsets = [6, 0], sizes = [1, 256], strides = [1, 1]} : vector<8x256xf32> to vector<1x256xf32>
    %108 = vector.shape_cast %107 : vector<1x256xf32> to vector<256xf32>
    %109 = vector.shape_cast %108 : vector<256xf32> to vector<1x256xf32>
    %110 = vector.broadcast %106 : f32 to vector<1x256xf32>
    %111 = arith.mulf %110, %109 : vector<1x256xf32>
    %112 = arith.addf %105, %111 : vector<1x256xf32>
    %c15 = arith.constant 15 : index
    %113 = memref.load %arg1[%c15] : memref<16xf32, #tpu.memory_space<smem>>
    %114 = vector.extract_strided_slice %1 {offsets = [7, 0], sizes = [1, 256], strides = [1, 1]} : vector<8x256xf32> to vector<1x256xf32>
    %115 = vector.shape_cast %114 : vector<1x256xf32> to vector<256xf32>
    %116 = vector.shape_cast %115 : vector<256xf32> to vector<1x256xf32>
    %117 = vector.broadcast %113 : f32 to vector<1x256xf32>
    %118 = arith.mulf %117, %116 : vector<1x256xf32>
    %119 = arith.addf %112, %118 : vector<1x256xf32>
    %cst_5 = arith.constant 0.000000e+00 : f32
    %120 = vector.broadcast %cst_5 : f32 to vector<1x256xf32>
    %121 = arith.maximumf %119, %120 : vector<1x256xf32>
    %cst_6 = arith.constant 0.000000e+00 : f32
    %122 = vector.broadcast %cst_6 : f32 to vector<8x256xf32>
    %c0_7 = arith.constant 0 : index
    %123 = memref.load %arg4[%c0_7] : memref<9xf32, #tpu.memory_space<smem>>
    %124 = vector.broadcast %123 : f32 to vector<1x256xf32>
    %c0_8 = arith.constant 0 : index
    %125 = memref.load %arg3[%c0_8] : memref<18xf32, #tpu.memory_space<smem>>
    %126 = vector.broadcast %125 : f32 to vector<1x256xf32>
    %127 = arith.mulf %126, %61 : vector<1x256xf32>
    %128 = arith.addf %124, %127 : vector<1x256xf32>
    %c1_9 = arith.constant 1 : index
    %129 = memref.load %arg3[%c1_9] : memref<18xf32, #tpu.memory_space<smem>>
    %130 = vector.broadcast %129 : f32 to vector<1x256xf32>
    %131 = arith.mulf %130, %121 : vector<1x256xf32>
    %132 = arith.addf %128, %131 : vector<1x256xf32>
    %c0_10 = arith.constant 0 : index
    %c0_11 = arith.constant 0 : index
    %133 = vector.load %arg5[%c0_10, %c0_11] : memref<9x256xf32, #tpu.memory_space<vmem>>, vector<1x256xf32>
    %134 = vector.shape_cast %133 : vector<1x256xf32> to vector<256xf32>
    %135 = vector.shape_cast %134 : vector<256xf32> to vector<1x256xf32>
    %136 = arith.mulf %132, %135 : vector<1x256xf32>
    %c17_i32 = arith.constant 17 : i32
    %137 = tpu.dynamic_rotate %1 by %c17_i32 dim 1 : vector<8x256xf32>, i32 -> vector<8x256xf32>
    %138 = vector.broadcast %136 : vector<1x256xf32> to vector<8x256xf32>
    %139 = arith.mulf %138, %137 : vector<8x256xf32>
    %140 = arith.addf %122, %139 : vector<8x256xf32>
    %c1_12 = arith.constant 1 : index
    %141 = memref.load %arg4[%c1_12] : memref<9xf32, #tpu.memory_space<smem>>
    %142 = vector.broadcast %141 : f32 to vector<1x256xf32>
    %c2_13 = arith.constant 2 : index
    %143 = memref.load %arg3[%c2_13] : memref<18xf32, #tpu.memory_space<smem>>
    %144 = vector.broadcast %143 : f32 to vector<1x256xf32>
    %145 = arith.mulf %144, %61 : vector<1x256xf32>
    %146 = arith.addf %142, %145 : vector<1x256xf32>
    %c3_14 = arith.constant 3 : index
    %147 = memref.load %arg3[%c3_14] : memref<18xf32, #tpu.memory_space<smem>>
    %148 = vector.broadcast %147 : f32 to vector<1x256xf32>
    %149 = arith.mulf %148, %121 : vector<1x256xf32>
    %150 = arith.addf %146, %149 : vector<1x256xf32>
    %c1_15 = arith.constant 1 : index
    %c0_16 = arith.constant 0 : index
    %151 = vector.load %arg5[%c1_15, %c0_16] : memref<9x256xf32, #tpu.memory_space<vmem>>, vector<1x256xf32>
    %152 = vector.shape_cast %151 : vector<1x256xf32> to vector<256xf32>
    %153 = vector.shape_cast %152 : vector<256xf32> to vector<1x256xf32>
    %154 = arith.mulf %150, %153 : vector<1x256xf32>
    %c16_i32 = arith.constant 16 : i32
    %155 = tpu.dynamic_rotate %1 by %c16_i32 dim 1 : vector<8x256xf32>, i32 -> vector<8x256xf32>
    %156 = vector.broadcast %154 : vector<1x256xf32> to vector<8x256xf32>
    %157 = arith.mulf %156, %155 : vector<8x256xf32>
    %158 = arith.addf %140, %157 : vector<8x256xf32>
    %c2_17 = arith.constant 2 : index
    %159 = memref.load %arg4[%c2_17] : memref<9xf32, #tpu.memory_space<smem>>
    %160 = vector.broadcast %159 : f32 to vector<1x256xf32>
    %c4_18 = arith.constant 4 : index
    %161 = memref.load %arg3[%c4_18] : memref<18xf32, #tpu.memory_space<smem>>
    %162 = vector.broadcast %161 : f32 to vector<1x256xf32>
    %163 = arith.mulf %162, %61 : vector<1x256xf32>
    %164 = arith.addf %160, %163 : vector<1x256xf32>
    %c5_19 = arith.constant 5 : index
    %165 = memref.load %arg3[%c5_19] : memref<18xf32, #tpu.memory_space<smem>>
    %166 = vector.broadcast %165 : f32 to vector<1x256xf32>
    %167 = arith.mulf %166, %121 : vector<1x256xf32>
    %168 = arith.addf %164, %167 : vector<1x256xf32>
    %c2_20 = arith.constant 2 : index
    %c0_21 = arith.constant 0 : index
    %169 = vector.load %arg5[%c2_20, %c0_21] : memref<9x256xf32, #tpu.memory_space<vmem>>, vector<1x256xf32>
    %170 = vector.shape_cast %169 : vector<1x256xf32> to vector<256xf32>
    %171 = vector.shape_cast %170 : vector<256xf32> to vector<1x256xf32>
    %172 = arith.mulf %168, %171 : vector<1x256xf32>
    %c15_i32 = arith.constant 15 : i32
    %173 = tpu.dynamic_rotate %1 by %c15_i32 dim 1 : vector<8x256xf32>, i32 -> vector<8x256xf32>
    %174 = vector.broadcast %172 : vector<1x256xf32> to vector<8x256xf32>
    %175 = arith.mulf %174, %173 : vector<8x256xf32>
    %176 = arith.addf %158, %175 : vector<8x256xf32>
    %c3_22 = arith.constant 3 : index
    %177 = memref.load %arg4[%c3_22] : memref<9xf32, #tpu.memory_space<smem>>
    %178 = vector.broadcast %177 : f32 to vector<1x256xf32>
    %c6_23 = arith.constant 6 : index
    %179 = memref.load %arg3[%c6_23] : memref<18xf32, #tpu.memory_space<smem>>
    %180 = vector.broadcast %179 : f32 to vector<1x256xf32>
    %181 = arith.mulf %180, %61 : vector<1x256xf32>
    %182 = arith.addf %178, %181 : vector<1x256xf32>
    %c7_24 = arith.constant 7 : index
    %183 = memref.load %arg3[%c7_24] : memref<18xf32, #tpu.memory_space<smem>>
    %184 = vector.broadcast %183 : f32 to vector<1x256xf32>
    %185 = arith.mulf %184, %121 : vector<1x256xf32>
    %186 = arith.addf %182, %185 : vector<1x256xf32>
    %c3_25 = arith.constant 3 : index
    %c0_26 = arith.constant 0 : index
    %187 = vector.load %arg5[%c3_25, %c0_26] : memref<9x256xf32, #tpu.memory_space<vmem>>, vector<1x256xf32>
    %188 = vector.shape_cast %187 : vector<1x256xf32> to vector<256xf32>
    %189 = vector.shape_cast %188 : vector<256xf32> to vector<1x256xf32>
    %190 = arith.mulf %186, %189 : vector<1x256xf32>
    %c1_i32 = arith.constant 1 : i32
    %191 = tpu.dynamic_rotate %1 by %c1_i32 dim 1 : vector<8x256xf32>, i32 -> vector<8x256xf32>
    %192 = vector.broadcast %190 : vector<1x256xf32> to vector<8x256xf32>
    %193 = arith.mulf %192, %191 : vector<8x256xf32>
    %194 = arith.addf %176, %193 : vector<8x256xf32>
    %c4_27 = arith.constant 4 : index
    %195 = memref.load %arg4[%c4_27] : memref<9xf32, #tpu.memory_space<smem>>
    %196 = vector.broadcast %195 : f32 to vector<1x256xf32>
    %c8_28 = arith.constant 8 : index
    %197 = memref.load %arg3[%c8_28] : memref<18xf32, #tpu.memory_space<smem>>
    %198 = vector.broadcast %197 : f32 to vector<1x256xf32>
    %199 = arith.mulf %198, %61 : vector<1x256xf32>
    %200 = arith.addf %196, %199 : vector<1x256xf32>
    %c9_29 = arith.constant 9 : index
    %201 = memref.load %arg3[%c9_29] : memref<18xf32, #tpu.memory_space<smem>>
    %202 = vector.broadcast %201 : f32 to vector<1x256xf32>
    %203 = arith.mulf %202, %121 : vector<1x256xf32>
    %204 = arith.addf %200, %203 : vector<1x256xf32>
    %c4_30 = arith.constant 4 : index
    %c0_31 = arith.constant 0 : index
    %205 = vector.load %arg5[%c4_30, %c0_31] : memref<9x256xf32, #tpu.memory_space<vmem>>, vector<1x256xf32>
    %206 = vector.shape_cast %205 : vector<1x256xf32> to vector<256xf32>
    %207 = vector.shape_cast %206 : vector<256xf32> to vector<1x256xf32>
    %208 = arith.mulf %204, %207 : vector<1x256xf32>
    %209 = vector.broadcast %208 : vector<1x256xf32> to vector<8x256xf32>
    %210 = arith.mulf %209, %1 : vector<8x256xf32>
    %211 = arith.addf %194, %210 : vector<8x256xf32>
    %c5_32 = arith.constant 5 : index
    %212 = memref.load %arg4[%c5_32] : memref<9xf32, #tpu.memory_space<smem>>
    %213 = vector.broadcast %212 : f32 to vector<1x256xf32>
    %c10_33 = arith.constant 10 : index
    %214 = memref.load %arg3[%c10_33] : memref<18xf32, #tpu.memory_space<smem>>
    %215 = vector.broadcast %214 : f32 to vector<1x256xf32>
    %216 = arith.mulf %215, %61 : vector<1x256xf32>
    %217 = arith.addf %213, %216 : vector<1x256xf32>
    %c11_34 = arith.constant 11 : index
    %218 = memref.load %arg3[%c11_34] : memref<18xf32, #tpu.memory_space<smem>>
    %219 = vector.broadcast %218 : f32 to vector<1x256xf32>
    %220 = arith.mulf %219, %121 : vector<1x256xf32>
    %221 = arith.addf %217, %220 : vector<1x256xf32>
    %c5_35 = arith.constant 5 : index
    %c0_36 = arith.constant 0 : index
    %222 = vector.load %arg5[%c5_35, %c0_36] : memref<9x256xf32, #tpu.memory_space<vmem>>, vector<1x256xf32>
    %223 = vector.shape_cast %222 : vector<1x256xf32> to vector<256xf32>
    %224 = vector.shape_cast %223 : vector<256xf32> to vector<1x256xf32>
    %225 = arith.mulf %221, %224 : vector<1x256xf32>
    %c255_i32 = arith.constant 255 : i32
    %226 = tpu.dynamic_rotate %1 by %c255_i32 dim 1 : vector<8x256xf32>, i32 -> vector<8x256xf32>
    %227 = vector.broadcast %225 : vector<1x256xf32> to vector<8x256xf32>
    %228 = arith.mulf %227, %226 : vector<8x256xf32>
    %229 = arith.addf %211, %228 : vector<8x256xf32>
    %c6_37 = arith.constant 6 : index
    %230 = memref.load %arg4[%c6_37] : memref<9xf32, #tpu.memory_space<smem>>
    %231 = vector.broadcast %230 : f32 to vector<1x256xf32>
    %c12_38 = arith.constant 12 : index
    %232 = memref.load %arg3[%c12_38] : memref<18xf32, #tpu.memory_space<smem>>
    %233 = vector.broadcast %232 : f32 to vector<1x256xf32>
    %234 = arith.mulf %233, %61 : vector<1x256xf32>
    %235 = arith.addf %231, %234 : vector<1x256xf32>
    %c13_39 = arith.constant 13 : index
    %236 = memref.load %arg3[%c13_39] : memref<18xf32, #tpu.memory_space<smem>>
    %237 = vector.broadcast %236 : f32 to vector<1x256xf32>
    %238 = arith.mulf %237, %121 : vector<1x256xf32>
    %239 = arith.addf %235, %238 : vector<1x256xf32>
    %c6_40 = arith.constant 6 : index
    %c0_41 = arith.constant 0 : index
    %240 = vector.load %arg5[%c6_40, %c0_41] : memref<9x256xf32, #tpu.memory_space<vmem>>, vector<1x256xf32>
    %241 = vector.shape_cast %240 : vector<1x256xf32> to vector<256xf32>
    %242 = vector.shape_cast %241 : vector<256xf32> to vector<1x256xf32>
    %243 = arith.mulf %239, %242 : vector<1x256xf32>
    %c241_i32 = arith.constant 241 : i32
    %244 = tpu.dynamic_rotate %1 by %c241_i32 dim 1 : vector<8x256xf32>, i32 -> vector<8x256xf32>
    %245 = vector.broadcast %243 : vector<1x256xf32> to vector<8x256xf32>
    %246 = arith.mulf %245, %244 : vector<8x256xf32>
    %247 = arith.addf %229, %246 : vector<8x256xf32>
    %c7_42 = arith.constant 7 : index
    %248 = memref.load %arg4[%c7_42] : memref<9xf32, #tpu.memory_space<smem>>
    %249 = vector.broadcast %248 : f32 to vector<1x256xf32>
    %c14_43 = arith.constant 14 : index
    %250 = memref.load %arg3[%c14_43] : memref<18xf32, #tpu.memory_space<smem>>
    %251 = vector.broadcast %250 : f32 to vector<1x256xf32>
    %252 = arith.mulf %251, %61 : vector<1x256xf32>
    %253 = arith.addf %249, %252 : vector<1x256xf32>
    %c15_44 = arith.constant 15 : index
    %254 = memref.load %arg3[%c15_44] : memref<18xf32, #tpu.memory_space<smem>>
    %255 = vector.broadcast %254 : f32 to vector<1x256xf32>
    %256 = arith.mulf %255, %121 : vector<1x256xf32>
    %257 = arith.addf %253, %256 : vector<1x256xf32>
    %c7_45 = arith.constant 7 : index
    %c0_46 = arith.constant 0 : index
    %258 = vector.load %arg5[%c7_45, %c0_46] : memref<9x256xf32, #tpu.memory_space<vmem>>, vector<1x256xf32>
    %259 = vector.shape_cast %258 : vector<1x256xf32> to vector<256xf32>
    %260 = vector.shape_cast %259 : vector<256xf32> to vector<1x256xf32>
    %261 = arith.mulf %257, %260 : vector<1x256xf32>
    %c240_i32 = arith.constant 240 : i32
    %262 = tpu.dynamic_rotate %1 by %c240_i32 dim 1 : vector<8x256xf32>, i32 -> vector<8x256xf32>
    %263 = vector.broadcast %261 : vector<1x256xf32> to vector<8x256xf32>
    %264 = arith.mulf %263, %262 : vector<8x256xf32>
    %265 = arith.addf %247, %264 : vector<8x256xf32>
    %c8_47 = arith.constant 8 : index
    %266 = memref.load %arg4[%c8_47] : memref<9xf32, #tpu.memory_space<smem>>
    %267 = vector.broadcast %266 : f32 to vector<1x256xf32>
    %c16 = arith.constant 16 : index
    %268 = memref.load %arg3[%c16] : memref<18xf32, #tpu.memory_space<smem>>
    %269 = vector.broadcast %268 : f32 to vector<1x256xf32>
    %270 = arith.mulf %269, %61 : vector<1x256xf32>
    %271 = arith.addf %267, %270 : vector<1x256xf32>
    %c17 = arith.constant 17 : index
    %272 = memref.load %arg3[%c17] : memref<18xf32, #tpu.memory_space<smem>>
    %273 = vector.broadcast %272 : f32 to vector<1x256xf32>
    %274 = arith.mulf %273, %121 : vector<1x256xf32>
    %275 = arith.addf %271, %274 : vector<1x256xf32>
    %c8_48 = arith.constant 8 : index
    %c0_49 = arith.constant 0 : index
    %276 = vector.load %arg5[%c8_48, %c0_49] : memref<9x256xf32, #tpu.memory_space<vmem>>, vector<1x256xf32>
    %277 = vector.shape_cast %276 : vector<1x256xf32> to vector<256xf32>
    %278 = vector.shape_cast %277 : vector<256xf32> to vector<1x256xf32>
    %279 = arith.mulf %275, %278 : vector<1x256xf32>
    %c239_i32 = arith.constant 239 : i32
    %280 = tpu.dynamic_rotate %1 by %c239_i32 dim 1 : vector<8x256xf32>, i32 -> vector<8x256xf32>
    %281 = vector.broadcast %279 : vector<1x256xf32> to vector<8x256xf32>
    %282 = arith.mulf %281, %280 : vector<8x256xf32>
    %283 = arith.addf %265, %282 : vector<8x256xf32>
    %c0_50 = arith.constant 0 : index
    %c0_51 = arith.constant 0 : index
    %c0_52 = arith.constant 0 : index
    %284 = vector.load %arg7[%c0_50, %c0_51, %c0_52] : memref<1x8x256xf32, #tpu.memory_space<vmem>>, vector<1x8x256xf32>
    %285 = vector.shape_cast %284 : vector<1x8x256xf32> to vector<8x256xf32>
    %286 = vector.shape_cast %283 : vector<8x256xf32> to vector<1x8x256xf32>
    tpu.vector_store %arg7[%c0_50, %c0_51, %c0_52], %286 {strides = array<i32>} : memref<1x8x256xf32, #tpu.memory_space<vmem>>, vector<1x8x256xf32>,
    return
  }
  func.func @transform_0(%arg0: i32) -> i32 {
    %c0_i32 = arith.constant 0 : i32
    %c0_i32_0 = arith.constant 0 : i32
    return %c0_i32 : i32
  }
  func.func @transform_1(%arg0: i32) -> i32 {
    %c0_i32 = arith.constant 0 : i32
    %c0_i32_0 = arith.constant 0 : i32
    return %c0_i32 : i32
  }
  func.func @transform_2(%arg0: i32) -> i32 {
    %c0_i32 = arith.constant 0 : i32
    %c0_i32_0 = arith.constant 0 : i32
    return %c0_i32 : i32
  }
  func.func @transform_3(%arg0: i32) -> i32 {
    %c0_i32 = arith.constant 0 : i32
    %c0_i32_0 = arith.constant 0 : i32
    return %c0_i32 : i32
  }
  func.func @transform_4(%arg0: i32) -> (i32, i32) {
    %c0_i32 = arith.constant 0 : i32
    %c0_i32_0 = arith.constant 0 : i32
    %c0_i32_1 = arith.constant 0 : i32
    return %c0_i32, %c0_i32_0 : i32, i32
  }
  func.func @transform_5(%arg0: i32) -> (i32, i32, i32) {
    %c0_i32 = arith.constant 0 : i32
    %c0_i32_0 = arith.constant 0 : i32
    %c0_i32_1 = arith.constant 0 : i32
    return %arg0, %c0_i32, %c0_i32_0 : i32, i32, i32
  }
  func.func @transform_6(%arg0: i32) -> (i32, i32, i32) {
    %c0_i32 = arith.constant 0 : i32
    %c0_i32_0 = arith.constant 0 : i32
    %c0_i32_1 = arith.constant 0 : i32
    return %arg0, %c0_i32, %c0_i32_0 : i32, i32, i32
  }
}

</mosaic_0001>

<bundles_post_ra>
// kernel: involution2d_forward.2
= control target key start
LH: loop header
LB: loop body
LE: loop exit
PB: predicated region body
PF: predicated region fallthrough
CT: control target
= control target key end

     0   :  { %vm31_vm0 = vcmask 64512   ;;  %v200_v3 = vmov 0   ;;  %vm75_vm1 = vcmask 1041408   ;;  %vm179_vm5 = vcmask 1024   ;;  %s288_s0 = inlined_call_operand.vmem [shape: f32[2,8,256], index: 0, kind: input, shape index: {}]   ;;  %s289_s1 = inlined_call_operand.vmem [shape: f32[2,8], index: 1, kind: input, shape index: {}]   ;;  %s290_s2 = inlined_call_operand.vmem [shape: f32[2,1], index: 2, kind: input, shape index: {}]   ;;  %s291_s3 = inlined_call_operand.vmem [shape: f32[2,1], index: 3, kind: input, shape index: {}]   ;;  %s292_s4 = inlined_call_operand.vmem [shape: f32[2,1], index: 4, kind: input, shape index: {}]   ;;  %s293_s6 = inlined_call_operand.vmem [shape: f32[2,1], index: 6, kind: output, shape index: {1}]   ;;  %s294_s5 = inlined_call_operand.vmem [shape: f32[2,8], index: 5, kind: output, shape index: {0}]  }
   0x1   :  { %v191_v0 = vld [vmem:[%s288_s0 + $0x10] sm:$0xff]  ;;  %v192_v1 = vld [vmem:[%s288_s0 + $0x18] sm:$0xff]  ;;  %v245_v2 = vld [vmem:[%s289_s1] sm:$0x3]  ;;  %196 = vset.pattern.permute.xlu0 %v200_v3  ;;  %197 = vset.pattern.permute.xlu2 %v200_v3  ;;  %vm171_vm6 = vcmask 58368  }
   0x2   :  { %108 = vmatpush.msra.mxu2 %v191_v0  ;;  %128 = vmatpush.msra.mxu3 %v192_v1  ;;  %v23_v4 = vld [vmem:[%s288_s0] sm:$0xff]  ;;  %v24_v5 = vld [vmem:[%s288_s0 + $0x8] sm:$0xff] }
   0x3   :  { %193 = vmatmul.msk.f32.vlgmr.msra.gmra.mxu2 %vm31_vm0, %v245_v2  ;;  %194 = vmatmul.msk.f32.vlgmr.msra.gmra.mxu3 %vm31_vm0, %v245_v2  ;;  %v25_v6 = vld [vmem:[%s290_s2] sm:$0x3] }
   0x4   :  { %50 = vmatpush.msra.mxu0 %v23_v4  ;;  %70 = vmatpush.msra.mxu1 %v24_v5  ;;  %v152_v49 = vld [vmem:[%s291_s3] sm:$0x3] }
   0x5   :  { %189 = vmatmul.msk.f32.vlgmr.msra.gmra.mxu0 %vm31_vm0, %v245_v2  ;;  %190 = vmatmul.msk.f32.vlgmr.msra.gmra.mxu1 %vm31_vm0, %v245_v2  ;;  %v173_v51 = vld [vmem:[%s290_s2] sm:$0x3] }
   0x6   :  { %28 = vperm.xlu0 %196, %v25_v6   ;;  %v175_v54 = vld [vmem:[%s292_s4] sm:$0x3] }
  0x78   :  { %v29_v7 = vpop.permute.xlu0 %28 }
  0x82   :  { %v52_v8 = vpop.f32.mrf.mxu0  ;;  %v72_v9 = vpop.f32.mrf.mxu1 }
  0x83   :  { %v53_v10 = vadd.f32 %v52_v8, %v29_v7  ;;  %v73_v11 = vadd.f32 %v72_v9, %v29_v7 }
  0x85   :  { %v76_v12 = vsel %vm75_vm1, %v53_v10, 0.0  ;;  %v77_v13 = vsel %vm75_vm1, %v73_v11, 0.0  ;;  %v82_v24 = vmul.f32 %v53_v10, %v53_v10  ;;  %v83_v25 = vmul.f32 %v73_v11, %v73_v11 }
  0x86   :  { %v110_v14 = vpop.f32.mrf.mxu2  ;;  %v130_v15 = vpop.f32.mrf.mxu3  ;;  %v78_v16 = vadd.f32 %v77_v13, %v76_v12 }
  0x87   :  { %v111_v17 = vadd.f32 %v110_v14, %v29_v7  ;;  %v131_v18 = vadd.f32 %v130_v15, %v29_v7  ;;  %v84_v29 = vsel %vm75_vm1, %v82_v24, 0.0  ;;  %v85_v30 = vsel %vm75_vm1, %v83_v25, 0.0 }
  0x88   :  { %79 = vadd.xlane.f32.xlu0 %v78_v16  ;;  %v86_v31 = vadd.f32 %v85_v30, %v84_v29 }
  0x89   :  { %v139_v19 = vmul.f32 %v111_v17, %v111_v17  ;;  %v140_v20 = vmul.f32 %v131_v18, %v131_v18  ;;  %v133_v21 = vsel %vm75_vm1, %v111_v17, 0.0  ;;  %v134_v22 = vsel %vm75_vm1, %v131_v18, 0.0 }
  0x8a   :  { %v135_v23 = vadd.f32 %v134_v22, %v133_v21 }
  0x8b   :  { %v141_v26 = vsel %vm75_vm1, %v139_v19, 0.0  ;;  %v142_v27 = vsel %vm75_vm1, %v140_v20, 0.0 }
  0x8c   :  { %136 = vadd.xlane.f32.xlu1 %v135_v23  ;;  %v143_v28 = vadd.f32 %v142_v27, %v141_v26 }
  0x8e   :  { %144 = vadd.xlane.f32.xlu2 %v143_v28 }
  0x94   :  { %87 = vadd.xlane.f32.xlu1 %v86_v31 }
  0xfb   :  { %v80_v33 = vpop.xlane.xlu0 %79 }
  0xff   :  { %v137_v32 = vpop.xlane.xlu1 %136 }
 0x100   :  { %v138_v34 = vadd.f32 %v137_v32, %v80_v33 }
 0x101   :  { %v145_v36 = vpop.xlane.xlu2 %144 }
 0x102   :  { %v147_v35 = vmul.f32 0.001953125, %v138_v34 }
 0x104   :  { %v149_v39 = vmul.f32 %v147_v35, %v147_v35 }
 0x107   :  { %v88_v37 = vpop.xlane.xlu1 %87 }
 0x108   :  { %v146_v38 = vadd.f32 %v145_v36, %v88_v37 }
 0x10a   :  { %v148_v40 = vmul.f32 0.001953125, %v146_v38 }
 0x10c   :  { %v150_v41 = vsub.f32 %v148_v40, %v149_v39 }
 0x10e   :  { %v151_v42 = vmax.f32 %v150_v41, 0.0 }
 0x110   :  { %v153_v43 = vadd.f32 1e-05, %v151_v42 }
 0x112   :  { %198 = vrsqrt.f32 %v153_v43  ;;  %vm160_vm3 = vweird.f32 %v153_v43 }
 0x118   :  { %v199_v44 = vpop.eup %198 }
 0x119   :  { %v155_v45 = vmul.f32 %v199_v44, %v153_v43  ;;  %vm161_vm2 = vweird.f32 %v199_v44 }
 0x11a   :  { %vm162_vm4 = vmor %vm160_vm3, %vm161_vm2 }
 0x11b   :  { %v156_v46 = vmul.f32 %v199_v44, %v155_v45 }
 0x11d   :  { %v157_v47 = vmul.f32 0.5, %v156_v46 }
 0x11f   :  { %v158_v48 = vsub.f32 1.5, %v157_v47 }
 0x121   :  { %v159_v50 = vmul.f32 %v199_v44, %v158_v48 }
 0x123   :  { %v163_v52 = vsel %vm162_vm4, %v199_v44, %v159_v50 }
 0x124   :  { %v164_v53 = vmul.f32 %v163_v52, %v152_v49 }
 0x126   :  { %167 = vperm.xlu2 %197, %v164_v53   ;;  %v174_v55 = vmul.f32 %v173_v51, %v164_v53  ;;  %v177_v57 = vmul.f32 %v164_v53, %v147_v35 }
 0x128   :  { %v176_v56 = vadd.f32 %v175_v54, %v174_v55 }
 0x12a   :  { %v178_v58 = vsub.f32 %v176_v56, %v177_v57 }
 0x12c   :  { %180 = vst.msk [vmem:[%s293_s6] sm:$0x3] %vm179_vm5, %v178_v58 }
 0x180   :  { %v168_v59 = vpop.permute.xlu2 %167 }
 0x181   :  { %v170_v60 = vmul.f32 %v168_v59, %v245_v2 }
 0x183   :  { %172 = vst.msk [vmem:[%s294_s5] sm:$0x3] %vm171_vm6, %v170_v60 }

// kernel: involution2d_forward.3
= control target key start
LH: loop header
LB: loop body
LE: loop exit
PB: predicated region body
PF: predicated region fallthrough
CT: control target
= control target key end

     0   :  { %11 = vsyncpa [#allocation3], 0  ;;  %s1633_s0 = inlined_call_operand.vmem [shape: f32[16], index: 0, kind: input, shape index: {}]   ;;  %s1634_s1 = inlined_call_operand.vmem [shape: f32[2], index: 1, kind: input, shape index: {}]   ;;  %s1635_s2 = inlined_call_operand.vmem [shape: f32[18], index: 2, kind: input, shape index: {}]   ;;  %s1636_s3 = inlined_call_operand.vmem [shape: f32[9], index: 3, kind: input, shape index: {}]   ;;  %s1637_s4 = inlined_call_operand.vmem [shape: f32[9,256], index: 4, kind: input, shape index: {}]   ;;  %s1638_s5 = inlined_call_operand.vmem [shape: f32[2,8,256], index: 5, kind: input, shape index: {}]   ;;  %s1639_s6 = inlined_call_operand.vmem [shape: f32[2,8,256], index: 6, kind: output, shape index: {}]  }
   0x1   :  { %12 = vsyncpa [#allocation5], 0 }
   0x2   :  { %13 = vsyncpa [#allocation8], 0  ;;  %s1164_s21 = smov 0  }
   0x3 LB: > { %s203_s24 = sshll.u32 %s1634_s1, 4  ;;  %s1173_s25 = sadd.s32 4294967295, %s1115_s21   ;;  %s1115_s21 = sphi %s1164_s21, %s19_s21   ;;  %s204_s24 = int_to_ptr.vmem [resolvable:$true] %s203_s24 }
   0x4   : > { %p912_p0 = scmp.ge.s32.totalorder %s1115_s21, 1  ;;  %p181_p1 = scmp.lt.s32.totalorder %s1115_s21, 3 }
   0x5   : > { %p1009_p2 = scmp.eq.s32.totalorder %s1173_s25, 0  ;;  %s193_s29 = sshll.u32 %s1633_s0, 4  ;;  %s194_s29 = int_to_ptr.vmem [resolvable:$true] %s193_s29 }
   0x6   : > { %p1178_p3 = pnand %p912_p0, %p181_p1  ;;  %s213_s8 = sshll.u32 %s1635_s2, 4  ;;  %s214_s8 = int_to_ptr.vmem [resolvable:$true] %s213_s8 }
   0x7   : > { %s223_s11 = sshll.u32 %s1636_s3, 4  ;;  %s1117_s12 = smov [#allocation4]   ;;  %s224_s11 = int_to_ptr.vmem [resolvable:$true] %s223_s11 }
   0x8   : > { %p996_p4 = pneg %p1178_p3  ;;  %s1118_s13 = smov [#allocation2]  }
   0x9   : > { %s1119_s14 = smov [#allocation6]   ;;  %s1120_s15 = smov [#allocation7]  }
   0xa   : > { %p997_p5 = pnand %p1009_p2, %p996_p4 }
   0xb   : > { %247 = sbr.rel (%p1178_p3) target bundleno = 191 (0xbf), region = 44 }
   0xc   : > { %1002 = dma.vmem_to_smem (!%p997_p5), %s204_s24, 16, %s1117_s12, [#allocation5]  }
   0xd   : > { %999 = dma.vmem_to_smem (!%p997_p5), %s194_s29, 16, %s1118_s13, [#allocation3]  }
   0xe   : > { %1005 = dma.vmem_to_smem (!%p997_p5), %s214_s8, 16, %s1119_s14, [#allocation5]  }
   0xf   : > { %1008 = dma.vmem_to_smem (!%p997_p5), %s224_s11, 16, %s1120_s15, [#allocation8]  }
  0x10   : > { %1102 = dma.done.wait (%p1009_p2), [#allocation3], 16  }
  0x11   : > { %1104 = vsyncadd (%p1009_p2), [#allocation3], 4294967280 }
  0x12   : > { %1106 = dma.done.wait (%p1009_p2), [#allocation5], 32  }
  0x13   : > { %1108 = vsyncadd (%p1009_p2), [#allocation5], 4294967264 }
  0x14   : > { %1110 = dma.done.wait (%p1009_p2), [#allocation8], 16  }
  0x15   : > { %1112 = vsyncadd (%p1009_p2), [#allocation8], 4294967280 }
  0x16   : > { %269 = sfence }
  0x17   : > { %p294_p6 = scmp.lt.s32.totalorder %s1173_s25, 1  ;;  %s1121_s20 = smov 16  }
  0x18   : > { %s1122_s22 = smov 17   ;;  %s1123_s23 = smov 15  }
  0x19   : > { %s1642_s25 = smov (!%p294_p6, %s1173_s25), 1  ;;  %s1124_s24 = smov 1  }
  0x1a   : > { %s978_s16 = sshll.u32 %s1642_s25, 4  ;;  %s1125_s26 = smov 127  }
  0x1b   : > { %s298_s19 = scalar_lea.vmem %s1638_s5, %s978_s16  ;;  %s1126_s27 = smov 113  }
  0x1c   : > { %v1219_v0 = vld [vmem:[%s298_s19] sm:$0xff]  ;;  %v1224_v1 = vld [vmem:[%s298_s19 + $0x8] sm:$0xff]  ;;  %s1127_s28 = smov 112   ;;  %s1128_s29 = smov 111  }
  0x1d   : > { %554 = vrot.lane.b32.xlu1 %v1219_v0, %s1121_s20  ;;  %516 = vrot.lane.b32.xlu0 %v1219_v0, %s1122_s22  ;;  %s1239_s30 = sld [smem:[#allocation4]] }
  0x1e   : > { %590 = vrot.lane.b32.xlu2 %v1219_v0, %s1123_s23  ;;  %s308_s7 = sld [smem:[#allocation2]] }
  0x1f   : > { %s927_s8 = sld [smem:[#allocation2 + $0x1]] }
  0x20   : > { %s1241_s9 = sld [smem:[#allocation2 + $0x2]] }
  0x21   : > { %s1243_s10 = sld [smem:[#allocation2 + $0x3]] }
  0x22   : > { %s1245_s11 = sld [smem:[#allocation2 + $0x8]] }
  0x23   : > { %s1247_s12 = sld [smem:[#allocation2 + $0x9]]  ;;  %v307_v8 = vstv %s1239_s30 }
  0x24   : > { %s1249_s13 = sld [smem:[#allocation4 + $0x1]]  ;;  %v309_v2 = vstv %s308_s7 }
  0x25   : > { %556 = vrot.lane.b32.xlu1 %v1224_v1, %s1121_s20  ;;  %518 = vrot.lane.b32.xlu0 %v1224_v1, %s1122_s22  ;;  %s1251_s14 = sld [smem:[#allocation2 + $0xa]]  ;;  %v315_v3 = vstv %s927_s8  ;;  %v311_v4 = vmul.f32 %v309_v2, %v1224_v1  ;;  %v310_v6 = vmul.f32 %v309_v2, %v1219_v0 }
  0x26   : > { %592 = vrot.lane.b32.xlu2 %v1224_v1, %s1123_s23  ;;  %s1253_s15 = sld [smem:[#allocation2 + $0x4]]  ;;  %v317_v5 = vmul.f32 %v315_v3, %v1224_v1  ;;  %v1267_v7 = vmul.f32 %v315_v3, %v1219_v0  ;;  %v327_v9 = vstv %s1241_s9 }
  0x27   : > { %s1255_s17 = sld [smem:[#allocation2 + $0xb]]  ;;  %v313_v12 = vadd.f32 %v311_v4, %v307_v8  ;;  %v329_v14 = vmul.f32 %v327_v9, %v1224_v1  ;;  %v339_v16 = vstv %s1243_s10  ;;  %v312_v59 = vadd.f32 %v310_v6, %v307_v8 }
  0x28   : > { %s1257_s18 = sld [smem:[#allocation2 + $0x5]]  ;;  %v403_v10 = vstv %s1245_s11  ;;  %v321_v13 = vrot.slane %v317_v5, 1  ;;  %v341_v22 = vmul.f32 %v339_v16, %v1224_v1  ;;  %v320_v63 = vrot.slane %v1267_v7, 1 }
  0x29   : > { %s1259_s19 = sld [smem:[#allocation2 + $0xc]]  ;;  %v409_v11 = vstv %s1247_s12  ;;  %v405_v15 = vmul.f32 %v403_v10, %v1224_v1  ;;  %v333_v21 = vrot.slane %v329_v14, 2  ;;  %v328_v4 = vmul.f32 %v327_v9, %v1219_v0 }
  0x2a   : > { %s1263_s20 = sld [smem:[#allocation2 + $0x6]]  ;;  %v401_v17 = vstv %s1249_s13  ;;  %v411_v18 = vmul.f32 %v409_v11, %v1224_v1  ;;  %v325_v20 = vadd.f32 %v321_v13, %v313_v12  ;;  %v345_v29 = vrot.slane %v341_v22, 3 }
  0x2b   : > { %s1273_s22 = sld [smem:[#allocation2 + $0xd]]  ;;  %v421_v19 = vstv %s1251_s14  ;;  %v407_v23 = vadd.f32 %v405_v15, %v401_v17  ;;  %v340_v5 = vmul.f32 %v339_v16, %v1219_v0  ;;  %v324_v12 = vadd.f32 %v320_v63, %v312_v59 }
  0x2c   : > { %s1276_s23 = sld [smem:[#allocation2 + $0x7]]  ;;  %v351_v24 = vstv %s1253_s15  ;;  %v415_v25 = vrot.slane %v411_v18, 1  ;;  %v423_v26 = vmul.f32 %v421_v19, %v1224_v1  ;;  %v337_v28 = vadd.f32 %v333_v21, %v325_v20 }
  0x2d   : > { %628 = vrot.lane.b32.xlu1 %v1224_v1, %s1124_s24  ;;  %626 = vrot.lane.b32.xlu0 %v1219_v0, %s1124_s24  ;;  %s1287_s24 = sld [smem:[#allocation2 + $0xe]]  ;;  %v433_v27 = vstv %s1255_s17  ;;  %v353_v30 = vmul.f32 %v351_v24, %v1224_v1  ;;  %v352_v13 = vmul.f32 %v351_v24, %v1219_v0  ;;  %v332_v6 = vrot.slane %v328_v4, 2 }
  0x2e   : > { %691 = vrot.lane.b32.xlu2 %v1219_v0, %s1125_s26  ;;  %v435_v31 = vmul.f32 %v433_v27, %v1224_v1  ;;  %v363_v32 = vstv %s1257_s18  ;;  %v419_v33 = vadd.f32 %v415_v25, %v407_v23  ;;  %v427_v34 = vrot.slane %v423_v26, 2  ;;  %s1357_s30 = sld [smem:[#allocation6 + $0x2]] }
  0x2f   : > { %v445_v35 = vstv %s1259_s19  ;;  %v349_v36 = vadd.f32 %v345_v29, %v337_v28  ;;  %v357_v37 = vrot.slane %v353_v30, 4  ;;  %v365_v38 = vmul.f32 %v363_v32, %v1224_v1  ;;  %s1359_s7 = sld [smem:[#allocation6]] }
  0x30   : > { %v439_v39 = vrot.slane %v435_v31, 3  ;;  %v375_v40 = vstv %s1263_s20  ;;  %v431_v41 = vadd.f32 %v427_v34, %v419_v33  ;;  %v447_v42 = vmul.f32 %v445_v35, %v1224_v1  ;;  %s1363_s8 = sld [smem:[#allocation7 + $0x1]] }
  0x31   : > { %v457_v43 = vstv %s1273_s22  ;;  %v361_v44 = vadd.f32 %v357_v37, %v349_v36  ;;  %v369_v45 = vrot.slane %v365_v38, 5  ;;  %v377_v46 = vmul.f32 %v375_v40, %v1224_v1  ;;  %s1369_s9 = sld [smem:[#allocation6 + $0x3]] }
  0x32   : > { %v459_v47 = vmul.f32 %v457_v43, %v1224_v1  ;;  %v387_v48 = vstv %s1276_s23  ;;  %v443_v49 = vadd.f32 %v439_v39, %v431_v41  ;;  %v451_v50 = vrot.slane %v447_v42, 4  ;;  %s1376_s12 = sld [smem:[#allocation7]] }
  0x33   : > { %v469_v51 = vstv %s1287_s24  ;;  %v373_v52 = vadd.f32 %v369_v45, %v361_v44  ;;  %v381_v53 = vrot.slane %v377_v46, 6  ;;  %v389_v54 = vmul.f32 %v387_v48, %v1224_v1  ;;  %s1378_s13 = sld [smem:[#allocation6 + $0x8]] }
  0x34   : > { %v463_v55 = vrot.slane %v459_v47, 5  ;;  %v455_v56 = vadd.f32 %v451_v50, %v443_v49  ;;  %v471_v57 = vmul.f32 %v469_v51, %v1224_v1  ;;  %v344_v8 = vrot.slane %v340_v5, 3  ;;  %s1380_s14 = sld [smem:[#allocation6 + $0x1]] }
  0x35   : > { %727 = vrot.lane.b32.xlu1 %v1219_v0, %s1126_s27  ;;  %693 = vrot.lane.b32.xlu0 %v1224_v1, %s1125_s26  ;;  %s1297_s26 = sld [smem:[#allocation2 + $0xf]]  ;;  %v385_v60 = vadd.f32 %v381_v53, %v373_v52  ;;  %v393_v61 = vrot.slane %v389_v54, 7  ;;  %v336_v18 = vadd.f32 %v332_v6, %v324_v12  ;;  %v356_v9 = vrot.slane %v352_v13, 4  ;;  %v1374_v53 = vld [vmem:[%s1637_s4 + $0x2] ss:$8 sm:$0x3] }
  0x36   : > { %729 = vrot.lane.b32.xlu2 %v1224_v1, %s1126_s27  ;;  %v467_v2 = vadd.f32 %v463_v55, %v455_v56  ;;  %v475_v3 = vrot.slane %v471_v57, 6  ;;  %s1321_s27 = sld [smem:[#allocation6 + $0x4]]  ;;  %v364_v16 = vmul.f32 %v363_v32, %v1219_v0  ;;  %v376_v23 = vmul.f32 %v375_v40, %v1219_v0 }
  0x37   : > { %v397_v14 = vadd.f32 %v393_v61, %v385_v60  ;;  %v348_v20 = vadd.f32 %v344_v8, %v336_v18  ;;  %v404_v24 = vmul.f32 %v403_v10, %v1219_v0  ;;  %v410_v25 = vmul.f32 %v409_v11, %v1219_v0  ;;  %s1383_s15 = sld [smem:[#allocation6 + $0x6]] }
  0x38   : > { %v479_v15 = vadd.f32 %v475_v3, %v467_v2  ;;  %v368_v28 = vrot.slane %v364_v16, 5  ;;  %v422_v29 = vmul.f32 %v421_v19, %v1219_v0  ;;  %v434_v30 = vmul.f32 %v433_v27, %v1219_v0  ;;  %s1385_s17 = sld [smem:[#allocation7 + $0x4]] }
  0x39   : > { %v1326_v21 = vmax.f32 %v397_v14, 0.0  ;;  %v360_v26 = vadd.f32 %v356_v9, %v348_v20  ;;  %v406_v32 = vadd.f32 %v404_v24, %v401_v17  ;;  %v414_v33 = vrot.slane %v410_v25, 1  ;;  %s1389_s18 = sld [smem:[#allocation6 + $0x9]] }
  0x3a   : > { %v446_v34 = vmul.f32 %v445_v35, %v1219_v0  ;;  %v426_v10 = vrot.slane %v422_v29, 2  ;;  %v388_v36 = vmul.f32 %v387_v48, %v1219_v0  ;;  %v438_v11 = vrot.slane %v434_v30, 3  ;;  %s1395_s19 = sld [smem:[#allocation7 + $0x3]] }
  0x3b   : > { %v481_v58 = vstv %s1297_s26  ;;  %v418_v37 = vadd.f32 %v414_v33, %v406_v32  ;;  %v458_v38 = vmul.f32 %v457_v43, %v1219_v0  ;;  %v372_v27 = vadd.f32 %v368_v28, %v360_v26  ;;  %s1401_s20 = sld [smem:[#allocation6 + $0x7]] }
  0x3c   : > { %v483_v62 = vmul.f32 %v481_v58, %v1224_v1  ;;  %v570_v31 = vstv %s1321_s27  ;;  %v380_v40 = vrot.slane %v376_v23, 6  ;;  %v450_v42 = vrot.slane %v446_v34, 4  ;;  %s1409_s22 = sld [smem:[#allocation6 + $0xa]]  ;;  %v1424_v23 = vld [vmem:[%s1637_s4 + $0x1] ss:$8 sm:$0x3] }
  0x3d   : > { %765 = vrot.lane.b32.xlu1 %v1224_v1, %s1127_s28  ;;  %763 = vrot.lane.b32.xlu0 %v1219_v0, %s1127_s28  ;;  %s1323_s28 = sld [smem:[#allocation7 + $0x2]]  ;;  %v572_v19 = vmul.f32 %v570_v31, %v1326_v21  ;;  %v430_v41 = vadd.f32 %v426_v10, %v418_v37  ;;  %v470_v35 = vmul.f32 %v469_v51, %v1219_v0  ;;  %v462_v46 = vrot.slane %v458_v38, 5 }
  0x3e   : > { %799 = vrot.lane.b32.xlu2 %v1219_v0, %s1128_s29  ;;  %v487_v7 = vrot.slane %v483_v62, 7  ;;  %v384_v47 = vadd.f32 %v380_v40, %v372_v27  ;;  %v392_v48 = vrot.slane %v388_v36, 7  ;;  %v482_v51 = vmul.f32 %v481_v58, %v1219_v0  ;;  %s1431_s26 = sld [smem:[#allocation7 + $0x5]] }
  0x3f   : > { %v442_v45 = vadd.f32 %v438_v11, %v430_v41  ;;  %v474_v52 = vrot.slane %v470_v35, 6  ;;  %v520_v55 = vlaneseq  ;;  %v585_v58 = vperm.slane %v1374_v53, 1  ;;  %s1492_s11 = sld [smem:[#allocation6 + $0xd]] }
  0x40   : > { %v491_v22 = vadd.f32 %v487_v7, %v479_v15  ;;  %v396_v56 = vadd.f32 %v392_v48, %v384_v47  ;;  %v486_v60 = vrot.slane %v482_v51, 7  ;;  %v534_v61 = vstv %s1357_s30  ;;  %s1565_s24 = sld [smem:[#allocation7 + $0x8]] }
  0x41   : > { %v454_v50 = vadd.f32 %v450_v42, %v442_v45  ;;  %v497_v62 = vstv %s1359_s7  ;;  %v1391_v63 = vand.u32 127, %v520_v55  ;;  %v536_v12 = vmul.f32 %v534_v61, %v1326_v21  ;;  %s1442_s7 = sld [smem:[#allocation6 + $0xb]] }
  0x42   : > { %v1353_v17 = vmax.f32 %v491_v22, 0.0  ;;  %v1393_v2 = vmax.f32 %v396_v56, 0.0  ;;  %v540_v13 = vstv %s1369_s9  ;;  %v499_v6 = vmul.f32 %v497_v62, %v1326_v21 }
  0x43   : > { %v568_v39 = vstv %s1323_s28  ;;  %v466_v54 = vadd.f32 %v462_v46, %v454_v50  ;;  %v532_v8 = vstv %s1363_s8  ;;  %v495_v14 = vstv %s1376_s12  ;;  %s1494_s12 = sld [smem:[#allocation7 + $0x6]] }
  0x44   : > { %v574_v43 = vadd.f32 %v572_v19, %v568_v39  ;;  %v642_v15 = vstv %s1378_s13  ;;  %v584_v7 = vperm.slane %v1374_v53, 0  ;;  %vm594_vm0 = vcmp.lt.s32.totalorder %v1391_v63, 15  ;;  %v1509_v53 = vld [vmem:[%s1637_s4 + $0x5] ss:$8 sm:$0x3]  ;;  %s1524_s13 = sld [smem:[#allocation7 + $0x7]] }
  0x45   : > { %801 = vrot.lane.b32.xlu0 %v1224_v1, %s1128_s29  ;;  %s1328_s29 = sld [smem:[#allocation6 + $0x5]]  ;;  %v478_v59 = vadd.f32 %v474_v52, %v466_v54  ;;  %v571_v18 = vmul.f32 %v570_v31, %v1393_v2  ;;  %v503_v9 = vstv %s1380_s14  ;;  %v542_v22 = vmul.f32 %v540_v13, %v1353_v17  ;;  %v1437_v31 = vld [vmem:[%s1637_s4] ss:$8 sm:$0x3] }
  0x46   : > { %v606_v24 = vstv %s1383_s15  ;;  %v538_v25 = vadd.f32 %v536_v12, %v532_v8  ;;  %v535_v26 = vmul.f32 %v534_v61, %v1393_v2  ;;  %v501_v28 = vadd.f32 %v499_v6, %v495_v14  ;;  %s1502_s14 = sld [smem:[#allocation6 + $0xe]] }
  0x47   : > { %v490_v5 = vadd.f32 %v486_v60, %v478_v59  ;;  %v644_v29 = vmul.f32 %v642_v15, %v1326_v21  ;;  %v505_v30 = vmul.f32 %v503_v9, %v1353_v17  ;;  %v498_v32 = vmul.f32 %v497_v62, %v1393_v2 }
  0x48   : > { %v640_v33 = vstv %s1385_s17  ;;  %v648_v34 = vstv %s1389_s18  ;;  %v573_v10 = vadd.f32 %v571_v18, %v568_v39  ;;  %v548_v36 = vperm.slane %v1424_v23, 0  ;;  %s1561_s18 = sld [smem:[#allocation6 + $0x11]] }
  0x49   : > { %v1418_v20 = vmax.f32 %v490_v5, 0.0  ;;  %v549_v37 = vperm.slane %v1424_v23, 1  ;;  %v608_v11 = vmul.f32 %v606_v24, %v1326_v21  ;;  %v604_v19 = vstv %s1395_s19 }
  0x4a   : > { %v612_v27 = vstv %s1401_s20  ;;  %v607_v40 = vmul.f32 %v606_v24, %v1393_v2  ;;  %v544_v41 = vadd.f32 %v542_v22, %v538_v25  ;;  %v511_v42 = vperm.slane %v1437_v31, 1  ;;  %s1530_s20 = sld [smem:[#allocation6 + $0xf]] }
  0x4b   : > { %v576_v44 = vstv %s1328_s29  ;;  %v646_v35 = vadd.f32 %v644_v29, %v640_v33  ;;  %v650_v39 = vmul.f32 %v648_v34, %v1353_v17  ;;  %v537_v46 = vadd.f32 %v535_v26, %v532_v8  ;;  %s1474_s29 = sld [smem:[#allocation6 + $0xc]] }
  0x4c   : > { %v578_v49 = vmul.f32 %v576_v44, %v1353_v17  ;;  %v577_v38 = vmul.f32 %v576_v44, %v1418_v20  ;;  %v500_v47 = vadd.f32 %v498_v32, %v495_v14  ;;  %v1464_v44 = vld [vmem:[%s1637_s4 + $0x4] ss:$8 sm:$0x3]  ;;  %v671_v48 = vstv %s1409_s22  ;;  %s1541_s22 = sld [smem:[#allocation6 + $0x10]] }
  0x4d   : > { %v541_v52 = vmul.f32 %v540_v13, %v1418_v20  ;;  %v504_v51 = vmul.f32 %v503_v9, %v1418_v20  ;;  %v610_v54 = vadd.f32 %v608_v11, %v604_v19  ;;  %v614_v55 = vmul.f32 %v612_v27, %v1353_v17 }
  0x4e   : > { %v580_v57 = vadd.f32 %v578_v49, %v574_v43  ;;  %v507_v43 = vadd.f32 %v505_v30, %v501_v28  ;;  %v579_v56 = vadd.f32 %v577_v38, %v573_v10  ;;  %v609_v59 = vadd.f32 %v607_v40, %v604_v19 }
  0x4f   : > { %v613_v60 = vmul.f32 %v612_v27, %v1418_v20  ;;  %v1481_v61 = vmul.f32 %v549_v37, %v544_v41  ;;  %v652_v62 = vadd.f32 %v650_v39, %v646_v35  ;;  %v657_v5 = vperm.slane %v1464_v44, 1 }
  0x50   : > { %v1399_v4 = vmul.f32 %v585_v58, %v580_v57  ;;  %v510_v57 = vperm.slane %v1437_v31, 0  ;;  %v955_v58 = vld [vmem:[%s1637_s4 + $0x3] ss:$8 sm:$0x3]  ;;  %v673_v12 = vmul.f32 %v671_v48, %v1326_v21  ;;  %v1488_v6 = vmul.f32 %v511_v42, %v507_v43 }
  0x51   : > { %v669_v8 = vstv %s1431_s26  ;;  %v677_v14 = vstv %s1442_s7  ;;  %v543_v18 = vadd.f32 %v541_v52, %v537_v46  ;;  %v506_v9 = vadd.f32 %v504_v51, %v500_v47 }
  0x52   : > { %v598_v16 = vperm.slane %v1399_v4, 0  ;;  %v616_v22 = vadd.f32 %v614_v55, %v610_v54  ;;  %v621_v23 = vperm.slane %v955_v58, 1  ;;  %v588_v24 = vmul.f32 %v584_v7, %v579_v56 }
  0x53   : > { %vm558_vm1 = vcmp.lt.s32.totalorder %v1391_v63, 16  ;;  %v620_v26 = vperm.slane %v955_v58, 0  ;;  %v615_v28 = vadd.f32 %v613_v60, %v609_v59  ;;  %vm522_vm2 = vcmp.lt.s32.totalorder %v1391_v63, 17 }
  0x54   : > { %v661_v29 = vmul.f32 %v657_v5, %v652_v62  ;;  %v675_v30 = vadd.f32 %v673_v12, %v669_v8  ;;  %v679_v31 = vmul.f32 %v677_v14, %v1353_v17  ;;  %v562_v32 = vperm.slane %v1481_v61, 0 }
  0x55   : > { %v526_v10 = vperm.slane %v1488_v6, 0  ;;  %v672_v37 = vmul.f32 %v671_v48, %v1393_v2  ;;  %v552_v38 = vmul.f32 %v548_v36, %v543_v18  ;;  %v514_v27 = vmul.f32 %v510_v57, %v506_v9 }
  0x56   : > { %v1521_v40 = vmul.f32 %v621_v23, %v616_v22  ;;  %v597_v4 = vperm.slane %v588_v24, 0  ;;  %v656_v41 = vperm.slane %v1464_v44, 0  ;;  %v686_v42 = vperm.slane %v1509_v53, 1 }
  0x57   : > { %v663_v35 = vperm.slane %v661_v29, 0  ;;  %v681_v36 = vadd.f32 %v679_v31, %v675_v30  ;;  %vm630_vm3 = vcmp.lt.s32.totalorder %v1391_v63, 1  ;;  %v674_v46 = vadd.f32 %v672_v37, %v669_v8 }
  0x58   : > { %v678_v43 = vmul.f32 %v677_v14, %v1418_v20  ;;  %v713_v44 = vstv %s1492_s11  ;;  %v561_v48 = vperm.slane %v552_v38, 0  ;;  %v525_v52 = vperm.slane %v514_v27, 0 }
  0x59   : > { %v634_v51 = vperm.slane %v1521_v40, 0  ;;  %v705_v54 = vstv %s1494_s12  ;;  %v685_v56 = vperm.slane %v1509_v53, 0  ;;  %v743_v57 = vstv %s1502_s14 }
  0x5a   : > { %v1556_v58 = vmul.f32 %v663_v35, %v1224_v1  ;;  %v1558_v59 = vmul.f32 %v686_v42, %v681_v36  ;;  %v715_v61 = vmul.f32 %v713_v44, %v1353_v17  ;;  %v680_v62 = vadd.f32 %v678_v43, %v674_v46 }
  0x5b   : > { %v741_v9 = vstv %s1524_s13  ;;  %v745_v22 = vmul.f32 %v743_v57, %v1326_v21  ;;  %vm695_vm4 = vcmp.lt.s32.totalorder %v1391_v63, 127  ;;  %v714_v30 = vmul.f32 %v713_v44, %v1418_v20 }
  0x5c   : > { %v779_v37 = vstv %s1541_s22  ;;  %vm731_vm5 = vcmp.lt.s32.totalorder %v1391_v63, 113  ;;  %v777_v46 = vstv %s1565_s24  ;;  %vm767_vm6 = vcmp.lt.s32.totalorder %v1391_v63, 112 }
  0x5d   : > { %v781_v6 = vmul.f32 %v779_v37, %v1326_v21  ;;  %v780_v35 = vmul.f32 %v779_v37, %v1393_v2  ;;  %vm803_vm7 = vcmp.lt.s32.totalorder %v1391_v63, 111 }
  0x78   : > { %v1397_v3 = vpop.permute.xlu2 %590 }
  0x80   : > { %v593_v45 = vpop.permute.xlu2 %592 }
  0x81   : > { %v595_v13 = vsel %vm594_vm0, %v1397_v3, %v593_v45  ;;  %v596_v25 = vsel %vm594_vm0, %v593_v45, %v1397_v3  ;;  %v643_v3 = vmul.f32 %v642_v15, %v1393_v2  ;;  %v707_v15 = vstv %s1474_s29  ;;  %s303_s29 = scalar_lea.vmem %s1639_s6, %s978_s16 }
  0x82   : > { %v1516_v7 = vmul.f32 %v598_v16, %v595_v13  ;;  %v1526_v16 = vmul.f32 %v620_v26, %v615_v28  ;;  %v649_v45 = vmul.f32 %v648_v34, %v1418_v20  ;;  %v709_v47 = vmul.f32 %v707_v15, %v1326_v21 }
  0x83   : > { %v645_v39 = vadd.f32 %v643_v3, %v640_v33  ;;  %v1548_v33 = vld [vmem:[%s1637_s4 + $0x6] ss:$8 sm:$0x3]  ;;  %v1550_v34 = vmul.f32 %v597_v4, %v596_v25  ;;  %v708_v13 = vmul.f32 %v707_v15, %v1393_v2  ;;  %v749_v25 = vstv %s1530_s20 }
  0x84   : > { %v633_v55 = vperm.slane %v1526_v16, 0  ;;  %v711_v5 = vadd.f32 %v709_v47, %v705_v54  ;;  %v721_v12 = vperm.slane %v1548_v33, 0  ;;  %v744_v26 = vmul.f32 %v743_v57, %v1393_v2  ;;  %v971_v16 = vld [vmem:[%s1637_s4 + $0x7] ss:$8 sm:$0x3] }
  0x85   : > { %v651_v60 = vadd.f32 %v649_v45, %v645_v39  ;;  %v722_v29 = vperm.slane %v1548_v33, 1  ;;  %v710_v3 = vadd.f32 %v708_v13, %v705_v54  ;;  %v751_v27 = vmul.f32 %v749_v25, %v1353_v17  ;;  %v975_v2 = vld [vmem:[%s1637_s4 + $0x10] ss:$8 sm:$0x3] }
  0x86   : > { %v689_v15 = vmul.f32 %v685_v56, %v680_v62  ;;  %v717_v4 = vadd.f32 %v715_v61, %v711_v5  ;;  %v758_v54 = vperm.slane %v971_v16, 1  ;;  %v757_v56 = vperm.slane %v971_v16, 0 }
  0x87   : > { %v660_v28 = vmul.f32 %v656_v41, %v651_v60  ;;  %v746_v41 = vadd.f32 %v744_v26, %v741_v9  ;;  %v716_v45 = vadd.f32 %v714_v30, %v710_v3  ;;  %v783_v60 = vadd.f32 %v781_v6, %v777_v46 }
  0x88   : > { %v692_v38 = vpop.permute.xlu2 %691  ;;  %v782_v61 = vadd.f32 %v780_v35, %v777_v46  ;;  %v698_v13 = vperm.slane %v689_v15, 0 }
  0x89   : > { %v662_v39 = vperm.slane %v660_v28, 0 }
  0x8b   : > { %v664_v5 = vmul.f32 %v662_v39, %v1219_v0 }
  0x8f   : > { %v1467_v49 = vpop.permute.xlu1 %554  ;;  %v1469_v50 = vpop.permute.xlu0 %516 }
  0x90   : > { %v730_v0 = vpop.permute.xlu2 %729 }
  0x97   : > { %v557_v11 = vpop.permute.xlu1 %556  ;;  %v519_v19 = vpop.permute.xlu0 %518 }
  0x98   : > { %v559_v1 = vsel %vm558_vm1, %v1467_v49, %v557_v11  ;;  %v560_v8 = vsel %vm558_vm1, %v557_v11, %v1467_v49  ;;  %v523_v23 = vsel %vm522_vm2, %v1469_v50, %v519_v19  ;;  %v524_v24 = vsel %vm522_vm2, %v519_v19, %v1469_v50 }
  0x99   : > { %v699_v49 = vperm.slane %v1558_v59, 0  ;;  %v563_v31 = vmul.f32 %v561_v48, %v560_v8  ;;  %v564_v53 = vmul.f32 %v562_v32, %v559_v1  ;;  %v527_v11 = vmul.f32 %v525_v52, %v524_v24 }
  0x9a   : > { %v528_v50 = vmul.f32 %v526_v10, %v523_v23  ;;  %v747_v19 = vadd.f32 %v745_v22, %v741_v9  ;;  %v750_v32 = vmul.f32 %v749_v25, %v1418_v20  ;;  %v785_v10 = vstv %s1561_s18 }
  0x9b   : > { %v565_v43 = vadd.f32 %v563_v31, %v527_v11  ;;  %v787_v21 = vmul.f32 %v785_v10, %v1353_v17  ;;  %v786_v62 = vmul.f32 %v785_v10, %v1418_v20  ;;  %v726_v1 = vmul.f32 %v722_v29, %v717_v4 }
  0x9c   : > { %v566_v47 = vadd.f32 %v564_v53, %v528_v50  ;;  %v753_v52 = vadd.f32 %v751_v27, %v747_v19  ;;  %v752_v57 = vadd.f32 %v750_v32, %v746_v41  ;;  %v794_v22 = vperm.slane %v975_v2, 1 }
  0x9d   : > { %v601_v17 = vadd.f32 %v1550_v34, %v565_v43  ;;  %v789_v24 = vadd.f32 %v787_v21, %v783_v60  ;;  %v788_v25 = vadd.f32 %v786_v62, %v782_v61 }
  0x9e   : > { %v602_v8 = vadd.f32 %v1516_v7, %v566_v47 }
  0x9f   : > { %v629_v14 = vpop.permute.xlu1 %628  ;;  %v627_v18 = vpop.permute.xlu0 %626  ;;  %v798_v50 = vmul.f32 %v794_v22, %v789_v24 }
  0xa0   : > { %v632_v42 = vsel %vm630_vm3, %v629_v14, %v627_v18  ;;  %v631_v36 = vsel %vm630_vm3, %v627_v18, %v629_v14  ;;  %v762_v14 = vmul.f32 %v758_v54, %v753_v52  ;;  %v793_v18 = vperm.slane %v975_v2, 0 }
  0xa1   : > { %v635_v33 = vmul.f32 %v633_v55, %v632_v42  ;;  %v636_v59 = vmul.f32 %v634_v51, %v631_v36  ;;  %v725_v55 = vmul.f32 %v721_v12, %v716_v45  ;;  %v761_v51 = vmul.f32 %v757_v56, %v752_v57  ;;  %v800_v42 = vpop.permute.xlu2 %799 }
  0xa2   : > { %v735_v12 = vperm.slane %v726_v1, 0  ;;  %v771_v53 = vperm.slane %v762_v14, 0  ;;  %v807_v6 = vperm.slane %v798_v50, 0 }
  0xa3   : > { %v637_v20 = vadd.f32 %v635_v33, %v601_v17  ;;  %v638_v23 = vadd.f32 %v636_v59, %v602_v8  ;;  %v734_v28 = vperm.slane %v725_v55, 0  ;;  %v770_v3 = vperm.slane %v761_v51, 0 }
  0xa5   : > { %v667_v37 = vadd.f32 %v1556_v58, %v638_v23  ;;  %v666_v11 = vadd.f32 %v664_v5, %v637_v20 }
  0xa7   : > { %v728_v44 = vpop.permute.xlu1 %727  ;;  %v694_v48 = vpop.permute.xlu0 %693 }
  0xa8   : > { %v696_v9 = vsel %vm695_vm4, %v692_v38, %v694_v48  ;;  %v697_v40 = vsel %vm695_vm4, %v694_v48, %v692_v38  ;;  %v732_v30 = vsel %vm731_vm5, %v728_v44, %v730_v0  ;;  %v733_v31 = vsel %vm731_vm5, %v730_v0, %v728_v44 }
  0xa9   : > { %v700_v26 = vmul.f32 %v698_v13, %v696_v9  ;;  %v701_v7 = vmul.f32 %v699_v49, %v697_v40  ;;  %v797_v38 = vmul.f32 %v793_v18, %v788_v25  ;;  %v736_v4 = vmul.f32 %v734_v28, %v732_v30 }
  0xaa   : > { %v737_v16 = vmul.f32 %v735_v12, %v733_v31 }
  0xab   : > { %v702_v27 = vadd.f32 %v700_v26, %v666_v11  ;;  %v703_v15 = vadd.f32 %v701_v7, %v667_v37  ;;  %v806_v10 = vperm.slane %v797_v38, 0 }
  0xad   : > { %v738_v35 = vadd.f32 %v736_v4, %v702_v27  ;;  %v739_v36 = vadd.f32 %v737_v16, %v703_v15 }
  0xaf   : > { %v766_v34 = vpop.permute.xlu1 %765  ;;  %v764_v29 = vpop.permute.xlu0 %763 }
  0xb0   : > { %v768_v19 = vsel %vm767_vm6, %v764_v29, %v766_v34  ;;  %v769_v49 = vsel %vm767_vm6, %v766_v34, %v764_v29 }
  0xb1   : > { %v772_v41 = vmul.f32 %v770_v3, %v768_v19  ;;  %v773_v32 = vmul.f32 %v771_v53, %v769_v49 }
  0xb3   : > { %v774_v46 = vadd.f32 %v772_v41, %v738_v35  ;;  %v775_v43 = vadd.f32 %v773_v32, %v739_v36 }
  0xb7   : > { %v802_v58 = vpop.permute.xlu0 %801 }
  0xb8   : > { %v804_v39 = vsel %vm803_vm7, %v800_v42, %v802_v58  ;;  %v805_v45 = vsel %vm803_vm7, %v802_v58, %v800_v42 }
  0xb9   : > { %v808_v47 = vmul.f32 %v806_v10, %v804_v39  ;;  %v809_v44 = vmul.f32 %v807_v6, %v805_v45 }
  0xbb   : > { %v810_v63 = vadd.f32 %v808_v47, %v774_v46  ;;  %v811_v48 = vadd.f32 %v809_v44, %v775_v43 }
  0xbd   : > { %812 = vst [vmem:[%s303_s29] sm:$0xff] %v810_v63 }
  0xbe   : > { %813 = vst [vmem:[%s303_s29 + $0x8] sm:$0xff] %v811_v48 }
  0xbf PF: > { %s19_s21 = sadd.s32 1, %s1115_s21  }
  0xc0   : > { %p16_p7 = scmp.ge.s32.totalorder %s19_s21, 4  }
  0xc2   :  { %18 = sbr.rel (!%p16_p7) target bundleno = 3 (0x3), region = 99 }
  0xc7   :  { %835 = vsyncpa [#allocation3], 1 }
  0xc8   :  { %837 = vsyncpa [#allocation3 + $0x1], 1 }
  0xc9   :  { %838 = vsyncpa [#allocation5], 1 }
  0xca   :  { %839 = vsyncpa [#allocation8], 1 }

</bundles_post_ra>
